<compile_context>
chip_gen: v6e
topology: v6e:2x2x1
jax: 0.10.0
libtpu: 0.0.40
codegen_flags: <defaults>
</compile_context>

<pallas_src>
import numpy as np
import jax
import jax.numpy as jnp
from jax.experimental import pallas as pl
from jax.experimental.pallas import tpu as pltpu

# problem sizes (small, consistent with the Linear-based forward)
TOT, D, O, L = 1024, 32, 16, 3   # total rows, in_features, out_features, #pieces
TB = 256                         # rows per grid tile (pipelined / megacore-parallel)
NW = L * O                       # lanes 0..NW-1 hold the L piece outputs
NG = NW + L                      # lanes NW..NG-1 hold the L g outputs
NCOL = 128                       # lane-dense padded matmul width
DP = ((D + 1 + 15) // 16) * 16   # contraction dim: D feats + 1 bias col, 16-aligned (bf16)


def make_kernel(Ks):
    """Ks: list of L python floats, baked into the traced kernel."""

    def kernel(x_ref, w_ref, o_ref):
        # One fused MXU push: all pieces, all g_k and both biases at once.
        ya = jnp.dot(x_ref[...], w_ref[...],
                     preferred_element_type=jnp.float32)          # (TB, 128) f32
        tb = ya.shape[0]

        # suffix max over the L g lanes: gmax_i = max_{k >= i} g_k  (L static)
        gmax = [None] * L
        run = ya[:, NG - 1:NG]
        gmax[L - 1] = run
        for i in range(L - 2, -1, -1):
            run = jnp.maximum(ya[:, NW + i:NW + i + 1], run)
            gmax[i] = run

        # threshold slab (f32 exact): piece-i lanes get K_i*gmax_i - K_i, rest 0
        lane = jax.lax.broadcasted_iota(jnp.int32, (tb, NCOL), 1)
        T = jnp.zeros((tb, NCOL), jnp.float32)
        for i in range(L):
            ti = Ks[i] * gmax[i] - Ks[i]                          # (tb, 1)
            T = jnp.where((lane >= i * O) & (lane < (i + 1) * O), ti, T)

        # full-width VPU: relu(y + t) - relu(-y + t) on the whole slab
        z = jnp.maximum(ya + T, 0.0) - jnp.maximum(T - ya, 0.0)   # (tb, 128)

        # reduce the L piece blocks into lanes [0, O); lane-dense (tb, 128) store
        res = z[:, 0:O]
        for i in range(1, L):
            res = res + z[:, i * O:(i + 1) * O]
        o_ref[...] = jnp.concatenate(
            [res, jnp.zeros((tb, NCOL - O), jnp.float32)], axis=1)

    return kernel


def multipnn_forward(x_aug, Wbig, Ks):
    tot = x_aug.shape[0]
    assert tot % TB == 0
    out = pl.pallas_call(
        make_kernel(Ks),
        out_shape=jax.ShapeDtypeStruct((tot, NCOL), jnp.float32),
        grid=(tot // TB,),
        in_specs=[
            pl.BlockSpec((TB, DP), lambda i: (i, 0)),       # x row block (pipelined)
            pl.BlockSpec((DP, NCOL), lambda i: (0, 0)),     # fused weight slab (pinned)
        ],
        out_specs=pl.BlockSpec((TB, NCOL), lambda i: (i, 0)),
        compiler_params=pltpu.CompilerParams(
            dimension_semantics=("parallel",)),
    )(x_aug, Wbig)
    return out[:, :O]                                        # lane-dense out, slice in JAX


def build_params():
    key = jax.random.PRNGKey(0)
    k1, k2, k3, k4, k5 = jax.random.split(key, 5)

    # cd_list in the reference holds cumulative (c, d); __init__ diffs them.
    c_steps = np.asarray(jax.random.normal(k1, (L, O, D)), np.float32) * 0.5
    d_steps = np.asarray(jax.random.normal(k2, (L, O)), np.float32) * 0.1
    cd_list = [(c_steps[:j + 1].sum(0), d_steps[:j + 1].sum(0)) for j in range(L)]

    # box bounds for the linprog in __init__ (closed form over a box)
    lo, hi = -np.ones(D, np.float32), np.ones(D, np.float32)

    temp_c, temp_d = 0.0, 0.0
    Ws, bs, Ks = [], [], []
    for c_cum, d_cum in cd_list:
        c = c_cum - temp_c
        d = d_cum - temp_d
        temp_c, temp_d = c + temp_c, d + temp_d
        # min/max of c_i . x over the box  lo <= x <= hi  (exact LP solution)
        mx = np.where(c > 0, c * hi, c * lo).sum(-1) + d
        mn = np.where(c > 0, c * lo, c * hi).sum(-1) + d
        K = float(np.max(np.maximum(np.abs(mx), np.abs(mn)), initial=0.0))
        Ws.append(c)
        bs.append(d)
        Ks.append(K)

    # synthetic affine g_list
    U = np.asarray(jax.random.normal(k3, (D, L)), np.float32) * 0.3
    v = np.asarray(jax.random.normal(k4, (1, L)), np.float32) * 0.1

    x = np.asarray(jax.random.normal(k5, (TOT, D)), np.float32)
    return x, Ws, bs, Ks, U, v


def pack_params(x, Ws, bs, U, v):
    # Augment x with a constant-1 column so all biases fold into the matmul;
    # pad contraction dim to a sublane multiple, output dim to 128 lanes.
    x_aug = np.zeros((x.shape[0], DP), np.float32)
    x_aug[:, :D] = x
    x_aug[:, D] = 1.0

    Wbig = np.zeros((DP, NCOL), np.float32)
    for i in range(L):
        Wbig[:D, i * O:(i + 1) * O] = Ws[i].T      # piece weights (D, O)
        Wbig[D, i * O:(i + 1) * O] = bs[i]         # piece bias
    Wbig[:D, NW:NG] = U                            # g weights (D, L)
    Wbig[D, NW:NG] = v[0]                          # g biases

    # bf16 MXU inputs; accumulation stays f32 inside the kernel
    return jnp.asarray(x_aug, jnp.bfloat16), jnp.asarray(Wbig, jnp.bfloat16)


def _bf16_round(a):
    return np.asarray(jnp.asarray(a, jnp.bfloat16).astype(jnp.float32))


def reference_forward(x, Ws, bs, Ks, U, v):
    # Host reference on the same bf16-rounded parameters (f32 math thereafter),
    # matching the kernel's deliberate bf16 MXU inputs + f32 accumulation.
    x = _bf16_round(x)
    g = x @ _bf16_round(U) + _bf16_round(v)        # (B, L)
    res = np.zeros((x.shape[0], O), np.float32)
    for i in range(L):
        gm = g[:, i:].max(axis=-1, keepdims=True)
        y = x @ _bf16_round(Ws[i]).T + _bf16_round(np.asarray(bs[i]))
        t = Ks[i] * gm - Ks[i]
        res = res + np.maximum(y + t, 0.0) - np.maximum(-y + t, 0.0)
    return res.astype(np.float32)


if __name__ == "__main__":
    x, Ws, bs, Ks, U, v = build_params()
    x_aug, Wbig = pack_params(x, Ws, bs, U, v)

    out = jax.block_until_ready(multipnn_forward(x_aug, Wbig, Ks))

    ref = reference_forward(x, Ws, bs, Ks, U, v)
    np.testing.assert_allclose(np.asarray(out), ref, rtol=2e-3, atol=2e-3)
    print("KERNEL_OK")
</pallas_src>

<mosaic_0001>
module attributes {stable_mosaic.version = 11 : i64} {
  func.func @kernel(%arg0: i32, %arg1: memref<256x48xbf16, #tpu.memory_space<vmem>>, %arg2: memref<48x128xbf16, #tpu.memory_space<vmem>>, %arg3: memref<256x128xf32, #tpu.memory_space<vmem>>) attributes {dimension_semantics = [#tpu.dimension_semantics<parallel>], iteration_bounds = array<i64: 4>, scalar_prefetch = 0 : i64, scratch_operands = 0 : i64, tpu.core_type = #tpu.core_type<tc>, window_params = [{transform_indices = @transform_0, window_bounds = array<i64: 256, 48>}, {pipeline_mode = #tpu.pipeline_mode<synchronous>, transform_indices = @transform_1, window_bounds = array<i64: 48, 128>}, {transform_indices = @transform_2, window_bounds = array<i64: 256, 128>}]} {
    %c0 = arith.constant 0 : index
    %c0_0 = arith.constant 0 : index
    %0 = vector.load %arg1[%c0, %c0_0] : memref<256x48xbf16, #tpu.memory_space<vmem>>, vector<256x48xbf16>
    %c0_1 = arith.constant 0 : index
    %c0_2 = arith.constant 0 : index
    %1 = vector.load %arg2[%c0_1, %c0_2] : memref<48x128xbf16, #tpu.memory_space<vmem>>, vector<48x128xbf16>
    %cst = arith.constant dense<0.000000e+00> : vector<256x128xf32>
    %2 = tpu.matmul %0, %1, %cst {dimension_numbers = #tpu.dot_dimension_numbers<[1], [0], [0], [1], [0, 0, 1, 1], [], []>} : vector<256x48xbf16>, vector<48x128xbf16>, vector<256x128xf32> -> vector<256x128xf32>
    %3 = vector.extract_strided_slice %2 {offsets = [0, 50], sizes = [256, 1], strides = [1, 1]} : vector<256x128xf32> to vector<256x1xf32>
    %4 = vector.extract_strided_slice %2 {offsets = [0, 49], sizes = [256, 1], strides = [1, 1]} : vector<256x128xf32> to vector<256x1xf32>
    %5 = arith.maximumf %4, %3 : vector<256x1xf32>
    %6 = vector.extract_strided_slice %2 {offsets = [0, 48], sizes = [256, 1], strides = [1, 1]} : vector<256x128xf32> to vector<256x1xf32>
    %7 = arith.maximumf %6, %5 : vector<256x1xf32>
    %8 = tpu.iota {dimensions = array<i32: 1>} : vector<256x128xi32>
    %cst_3 = arith.constant 0.000000e+00 : f32
    %9 = vector.broadcast %cst_3 : f32 to vector<256x128xf32>
    %cst_4 = arith.constant 16.7787209 : f32
    %10 = vector.broadcast %cst_4 : f32 to vector<256x1xf32>
    %11 = arith.mulf %10, %7 : vector<256x1xf32>
    %cst_5 = arith.constant 16.7787209 : f32
    %12 = vector.broadcast %cst_5 : f32 to vector<256x1xf32>
    %13 = arith.subf %11, %12 : vector<256x1xf32>
    %c0_i32 = arith.constant 0 : i32
    %14 = vector.broadcast %c0_i32 : i32 to vector<256x128xi32>
    %15 = arith.cmpi sge, %8, %14 : vector<256x128xi32>
    %c16_i32 = arith.constant 16 : i32
    %16 = vector.broadcast %c16_i32 : i32 to vector<256x128xi32>
    %17 = arith.cmpi slt, %8, %16 : vector<256x128xi32>
    %18 = arith.andi %15, %17 : vector<256x128xi1>
    %19 = vector.shape_cast %13 : vector<256x1xf32> to vector<256x1xf32>
    %20 = vector.broadcast %19 : vector<256x1xf32> to vector<256x128xf32>
    %21 = arith.select %18, %20, %9 : vector<256x128xi1>, vector<256x128xf32>
    %cst_6 = arith.constant 15.3965235 : f32
    %22 = vector.broadcast %cst_6 : f32 to vector<256x1xf32>
    %23 = arith.mulf %22, %5 : vector<256x1xf32>
    %cst_7 = arith.constant 15.3965235 : f32
    %24 = vector.broadcast %cst_7 : f32 to vector<256x1xf32>
    %25 = arith.subf %23, %24 : vector<256x1xf32>
    %c16_i32_8 = arith.constant 16 : i32
    %26 = vector.broadcast %c16_i32_8 : i32 to vector<256x128xi32>
    %27 = arith.cmpi sge, %8, %26 : vector<256x128xi32>
    %c32_i32 = arith.constant 32 : i32
    %28 = vector.broadcast %c32_i32 : i32 to vector<256x128xi32>
    %29 = arith.cmpi slt, %8, %28 : vector<256x128xi32>
    %30 = arith.andi %27, %29 : vector<256x128xi1>
    %31 = vector.shape_cast %25 : vector<256x1xf32> to vector<256x1xf32>
    %32 = vector.broadcast %31 : vector<256x1xf32> to vector<256x128xf32>
    %33 = arith.select %30, %32, %21 : vector<256x128xi1>, vector<256x128xf32>
    %cst_9 = arith.constant 16.6584854 : f32
    %34 = vector.broadcast %cst_9 : f32 to vector<256x1xf32>
    %35 = arith.mulf %34, %3 : vector<256x1xf32>
    %cst_10 = arith.constant 16.6584854 : f32
    %36 = vector.broadcast %cst_10 : f32 to vector<256x1xf32>
    %37 = arith.subf %35, %36 : vector<256x1xf32>
    %c32_i32_11 = arith.constant 32 : i32
    %38 = vector.broadcast %c32_i32_11 : i32 to vector<256x128xi32>
    %39 = arith.cmpi sge, %8, %38 : vector<256x128xi32>
    %c48_i32 = arith.constant 48 : i32
    %40 = vector.broadcast %c48_i32 : i32 to vector<256x128xi32>
    %41 = arith.cmpi slt, %8, %40 : vector<256x128xi32>
    %42 = arith.andi %39, %41 : vector<256x128xi1>
    %43 = vector.shape_cast %37 : vector<256x1xf32> to vector<256x1xf32>
    %44 = vector.broadcast %43 : vector<256x1xf32> to vector<256x128xf32>
    %45 = arith.select %42, %44, %33 : vector<256x128xi1>, vector<256x128xf32>
    %46 = arith.addf %2, %45 : vector<256x128xf32>
    %cst_12 = arith.constant 0.000000e+00 : f32
    %47 = vector.broadcast %cst_12 : f32 to vector<256x128xf32>
    %48 = arith.maximumf %46, %47 : vector<256x128xf32>
    %49 = arith.subf %45, %2 : vector<256x128xf32>
    %cst_13 = arith.constant 0.000000e+00 : f32
    %50 = vector.broadcast %cst_13 : f32 to vector<256x128xf32>
    %51 = arith.maximumf %49, %50 : vector<256x128xf32>
    %52 = arith.subf %48, %51 : vector<256x128xf32>
    %53 = vector.extract_strided_slice %52 {offsets = [0, 0], sizes = [256, 16], strides = [1, 1]} : vector<256x128xf32> to vector<256x16xf32>
    %54 = vector.extract_strided_slice %52 {offsets = [0, 16], sizes = [256, 16], strides = [1, 1]} : vector<256x128xf32> to vector<256x16xf32>
    %55 = arith.addf %53, %54 : vector<256x16xf32>
    %56 = vector.extract_strided_slice %52 {offsets = [0, 32], sizes = [256, 16], strides = [1, 1]} : vector<256x128xf32> to vector<256x16xf32>
    %57 = arith.addf %55, %56 : vector<256x16xf32>
    %cst_14 = arith.constant 0.000000e+00 : f32
    %58 = vector.broadcast %cst_14 : f32 to vector<256x112xf32>
    %59 = tpu.concatenate %57, %58 in 1 : vector<256x16xf32>, vector<256x112xf32> -> vector<256x128xf32>
    %c0_15 = arith.constant 0 : index
    %c0_16 = arith.constant 0 : index
    %60 = vector.load %arg3[%c0_15, %c0_16] : memref<256x128xf32, #tpu.memory_space<vmem>>, vector<256x128xf32>
    tpu.vector_store %arg3[%c0_15, %c0_16], %59 {strides = array<i32>} : memref<256x128xf32, #tpu.memory_space<vmem>>, vector<256x128xf32>,
    return
  }
  func.func @transform_0(%arg0: i32) -> (i32, i32) {
    %c0_i32 = arith.constant 0 : i32
    %c0_i32_0 = arith.constant 0 : i32
    return %arg0, %c0_i32 : i32, i32
  }
  func.func @transform_1(%arg0: i32) -> (i32, i32) {
    %c0_i32 = arith.constant 0 : i32
    %c0_i32_0 = arith.constant 0 : i32
    %c0_i32_1 = arith.constant 0 : i32
    return %c0_i32, %c0_i32_0 : i32, i32
  }
  func.func @transform_2(%arg0: i32) -> (i32, i32) {
    %c0_i32 = arith.constant 0 : i32
    %c0_i32_0 = arith.constant 0 : i32
    return %arg0, %c0_i32 : i32, i32
  }
}

</mosaic_0001>

<bundles_post_ra>
// kernel: tpu_custom_call.1
= control target key start
LH: loop header
LB: loop body
LE: loop exit
PB: predicated region body
PF: predicated region fallthrough
CT: control target
= control target key end

     0   :  { %7 = vsyncpa [#allocation3], 0  ;;  %s3707_s0 = inlined_call_operand.vmem [shape: bf16[1024,48], index: 0, kind: input, shape index: {}]   ;;  %s3708_s1 = inlined_call_operand.vmem [shape: bf16[48,128], index: 1, kind: input, shape index: {}]   ;;  %s3709_s2 = inlined_call_operand.hbm [shape: f32[1024,128], index: 2, kind: output, shape index: {}]  }
   0x1   :  { %9 = vsyncpa [#allocation3 + $0x1], 0  ;;  %s2546_s9 = smov 0   ;;  %s2548_s10 = smov 0  }
   0x2   :  { %s2550_s11 = smov 0   ;;  %s2552_s12 = smov 0  }
   0x3 LB: > { %s2567_s13 = sadd.s32 4294967295, %s2520_s12   ;;  %s2180_s14 = sadd.s32 4294967294, %s2520_s12   ;;  %s2520_s12 = sphi %s2552_s12, %s3843_s12   ;;  %s2516_s11 = sphi %s2550_s11, %s3842_s11   ;;  %s2512_s10 = sphi %s2548_s10, %s3841_s10   ;;  %s2508_s9 = sphi %s2546_s9, %s3840_s9  }
   0x4   : > { %s2571_s15 = sadd.s32 1, %s2520_s12   ;;  %s69_s16 = sadd.s32 1, %s2516_s11 }
   0x5   : > { %s66_s17 = ssub.s32 %s2520_s12, %s2571_s15  ;;  %p79_p0 = scmp.ne.s32.totalorder %s2516_s11, %s2512_s10 }
   0x6   : > { %p67_p1 = scmp.eq.s32.totalorder %s66_s17, 0  ;;  %p80_p2 = scmp.eq.s32.totalorder %s2567_s13, 3 }
   0x7   : > { %p85_p3 = scmp.ne.s32.totalorder %s2512_s10, %s2508_s9  ;;  %p86_p4 = scmp.eq.s32.totalorder %s2180_s14, 3 }
   0x8   : > { %s2582_s18 = scalar_select %p67_p1, %s2516_s11, %s69_s16  }
   0x9   : > { %p2584_p5 = por %p80_p2, %p79_p0  ;;  %p2588_p6 = por %p86_p4, %p85_p3 }
   0xa   : > { %p2183_p7 = scmp.ge.s32.totalorder %s2520_s12, 1  ;;  %p116_p8 = scmp.lt.s32.totalorder %s2520_s12, 5 }
   0xc   : > { %p117_p9 = pnand %p2183_p7, %p116_p8 }
   0xe   : > { %120 = sbr.rel (%p117_p9) target bundleno = 884 (0x374), region = 28 }
  0x13   : > { %v2441_v0 = vld [vmem:[%s3708_s1 + $0x10] sm:$0xff]   ;;  %s2185_s23 = sshll.u32 %s2567_s13, 5  ;;  %v2442_v1 = vld [vmem:[%s3708_s1 + $0x8] sm:$0xff]   ;;  %v2443_v2 = vld [vmem:[%s3708_s1] sm:$0xff]   ;;  %vm282_vm0 = vcmask 392192   ;;  %v3710_v19 = vmov 50  }
  0x14   : > { %p139_p10 = scmp.lt.s32.totalorder %s2185_s23, 127  ;;  %2343 = vmatprep.subr.bf16.mxu0 %v2441_v0  ;;  %2381 = vmatprep.subr.bf16.mxu1 %v2441_v0  ;;  %s2523_s4 = smov 127   ;;  %vm2039_vm8 = vcmask 130048  }
  0x15   : > { %2344 = vmatpush3.bf16.msra.mxu0 %v2441_v0  ;;  %2384 = vmatpush3.bf16.msra.mxu1 %v2441_v0  ;;  %s2526_s5 = smov 112   ;;  %s2527_s6 = smov 96  }
  0x16   : > { %s3845_s23 = smov (!%p139_p10, %s2185_s23), 127  ;;  %2345 = vmatprep.subr.bf16.mxu0 %v2442_v1  ;;  %2382 = vmatprep.subr.bf16.mxu1 %v2442_v1  ;;  %s135_s7 = sand.u32 1, %s2512_s10  }
  0x17   : > { %s2186_s28 = sshll.u32 %s3845_s23, 2  ;;  %2434 = vset.pattern.permute.xlu1 %v3710_v19  ;;  %2435 = vset.pattern.permute.xlu0 %v3710_v19  ;;  %s2184_s8 = sshll.u32 %s135_s7, 8 }
  0x18   : > { %s2607_s3 = scalar_lea.vmem %s3707_s0, %s2186_s28  ;;  %s3557_s14 = scalar_lea.vmem [#allocation2], %s2184_s8 }
  0x19   : > { %2346 = vmatpush3.bf16.msra.mxu0 %v2442_v1  ;;  %2385 = vmatpush3.bf16.msra.mxu1 %v2442_v1  ;;  %v2444_v3 = vld [vmem:[%s2607_s3] sm:$0xff]   ;;  %v2446_v5 = vld [vmem:[%s2607_s3 + $0x8] sm:$0xff]   ;;  %v2448_v7 = vld [vmem:[%s2607_s3 + $0x10] sm:$0xff]   ;;  %s2323_s16 = sshll.u32 %s2567_s13, 12  ;;  %s2118_s17 = sshll.u32 %s3557_s14, 4  ;;  %s3661_s17 = int_to_ptr.vmem [resolvable:$true] %s2118_s17 }
  0x1a   : > { %2347 = vmatprep.subr.bf16.mxu0 %v2443_v2  ;;  %2383 = vmatprep.subr.bf16.mxu1 %v2443_v2  ;;  %v2445_v4 = vld [vmem:[%s2607_s3 + $0x40] sm:$0xff]   ;;  %v2447_v6 = vld [vmem:[%s2607_s3 + $0x48] sm:$0xff]   ;;  %v2450_v8 = vld [vmem:[%s2607_s3 + $0x50] sm:$0xff]   ;;  %s3659_s23 = scalar_lea.hbm %s3709_s2, %s2323_s16  ;;  %s3667_s13 = scalar_lea.sflag [#allocation3], %s135_s7 }
  0x1b   : > { %2349 = vmatprep.mubr.msk.bf16.mxu0 %vm282_vm0, %v2444_v3  ;;  %2365 = vmatprep.mubr.msk.bf16.mxu1 %vm282_vm0, %v2445_v4  ;;  %v2449_v9 = vld [vmem:[%s2607_s3 + $0x18] sm:$0xff]   ;;  %v2452_v11 = vld [vmem:[%s2607_s3 + $0x20] sm:$0xff]   ;;  %v2453_v13 = vld [vmem:[%s2607_s3 + $0x28] sm:$0xff]   ;;  %s2460_s24 = scalar_lea.vmem %s3661_s17, 4096  ;;  %s2528_s25 = smov [#allocation2]  }
  0x1c   : > { %v2451_v10 = vld [vmem:[%s2607_s3 + $0x58] sm:$0xff]   ;;  %v2454_v12 = vld [vmem:[%s2607_s3 + $0x60] sm:$0xff]   ;;  %v2455_v14 = vld [vmem:[%s2607_s3 + $0x68] sm:$0xff]   ;;  %p2461_p11 = scmp.ne.s32.totalorder %s3661_s17, %s2460_s24  ;;  %s2464_s26 = sshll.u32 %s2528_s25, 4  ;;  %s2465_s26 = int_to_ptr.vmem [resolvable:$false] %s2464_s26 }
  0x1d   : > { %2348 = vmatpush3.bf16.msra.mxu0 %v2443_v2  ;;  %2386 = vmatpush3.bf16.msra.mxu1 %v2443_v2  ;;  %v2456_v15 = vld [vmem:[%s2607_s3 + $0x30] sm:$0xff]   ;;  %v2457_v17 = vld [vmem:[%s2607_s3 + $0x38] sm:$0xff]   ;;  %s2466_s27 = scalar_lea.vmem %s2465_s26, 8192  ;;  %p2467_p0 = scmp.lt.s32.totalorder %s3661_s17, %s2465_s26 }
  0x1e   : > { %v2458_v16 = vld [vmem:[%s2607_s3 + $0x70] sm:$0xff]   ;;  %v2459_v18 = vld [vmem:[%s2607_s3 + $0x78] sm:$0xff]   ;;  %p2462_p12 = pnand %p2461_p11, %p2584_p5  ;;  %p2468_p1 = scmp.lt.s32.totalorder %s2466_s27, %s2460_s24 }
  0x20   : > { %2350 = vmatmul.mubr.msk.bf16.vlgmr.msra.gmra.mxu0 %vm282_vm0, %v2446_v5  ;;  %2366 = vmatmul.mubr.msk.bf16.vlgmr.msra.gmra.mxu1 %vm282_vm0, %v2447_v6  ;;  %p2463_p13 = pneg %p2462_p12  ;;  %p2469_p2 = por %p2468_p1, %p2467_p0 }
  0x21   : > { %2353 = vmatprep.mubr.msk.bf16.mxu0 %vm282_vm0, %v2448_v7  ;;  %2369 = vmatprep.mubr.msk.bf16.mxu1 %vm282_vm0, %v2450_v8 }
  0x22   : > { %p2470_p3 = pnand %p2469_p2, %p2463_p13 }
  0x28   : > { %2354 = vmatmul.mubr.msk.bf16.gmra.mxu0 %vm282_vm0, %v2449_v9  ;;  %2370 = vmatmul.mubr.msk.bf16.gmra.mxu1 %vm282_vm0, %v2451_v10 }
  0x29   : > { %2357 = vmatprep.mubr.msk.bf16.mxu0 %vm282_vm0, %v2452_v11  ;;  %2373 = vmatprep.mubr.msk.bf16.mxu1 %vm282_vm0, %v2454_v12 }
  0x30   : > { %2358 = vmatmul.mubr.msk.bf16.gmra.mxu0 %vm282_vm0, %v2453_v13  ;;  %2374 = vmatmul.mubr.msk.bf16.gmra.mxu1 %vm282_vm0, %v2455_v14 }
  0x31   : > { %2361 = vmatprep.mubr.msk.bf16.mxu0 %vm282_vm0, %v2456_v15  ;;  %2377 = vmatprep.mubr.msk.bf16.mxu1 %vm282_vm0, %v2458_v16 }
  0x38   : > { %2362 = vmatmul.mubr.msk.bf16.gmra.mxu0 %vm282_vm0, %v2457_v17  ;;  %2378 = vmatmul.mubr.msk.bf16.gmra.mxu1 %vm282_vm0, %v2459_v18 }
  0xe0   : > { %v2643_v20 = vpop.f32.mrf.mxu0  ;;  %v2645_v21 = vpop.f32.mrf.mxu1 }
  0xe1   : > { %560 = vrot.lane.b32.xlu0 %v2645_v21, %s2523_s4  ;;  %528 = vrot.lane.b32.xlu1 %v2643_v20, %s2523_s4  ;;  %v1334_v25 = vmul.f32 16.658485, %v2643_v20  ;;  %v1350_v28 = vmul.f32 16.658485, %v2645_v21 }
  0xe2   : > { %v2651_v22 = vpop.f32.mrf.mxu0  ;;  %v2653_v23 = vpop.f32.mrf.mxu1 }
  0xe3   : > { %v2288_v27 = vadd.f32 -16.658485, %v1334_v25  ;;  %v1332_v29 = vmul.f32 16.658485, %v2651_v22  ;;  %v2304_v31 = vadd.f32 -16.658485, %v1350_v28 }
  0xe4   : > { %v2655_v24 = vpop.f32.mrf.mxu0  ;;  %v2662_v26 = vpop.f32.mrf.mxu1  ;;  %v1348_v33 = vmul.f32 16.658485, %v2653_v23 }
  0xe5   : > { %524 = vrot.lane.b32.xlu0 %v2651_v22, %s2523_s4  ;;  %530 = vrot.lane.b32.xlu1 %v2655_v24, %s2523_s4  ;;  %v2286_v32 = vadd.f32 -16.658485, %v1332_v29  ;;  %v1335_v38 = vmul.f32 16.658485, %v2655_v24  ;;  %v1351_v42 = vmul.f32 16.658485, %v2662_v26 }
  0xe6   : > { %v2670_v30 = vpop.f32.mrf.mxu0  ;;  %v2675_v34 = vpop.f32.mrf.mxu1  ;;  %v2302_v36 = vadd.f32 -16.658485, %v1348_v33 }
  0xe7   : > { %v1333_v37 = vmul.f32 16.658485, %v2670_v30  ;;  %v2289_v41 = vadd.f32 -16.658485, %v1335_v38  ;;  %v2305_v44 = vadd.f32 -16.658485, %v1351_v42 }
  0xe8   : > { %v2677_v35 = vpop.f32.mrf.mxu0  ;;  %v2685_v39 = vpop.f32.mrf.mxu1  ;;  %v1349_v50 = vmul.f32 16.658485, %v2675_v34 }
  0xe9   : > { %556 = vrot.lane.b32.xlu0 %v2653_v23, %s2523_s4  ;;  %562 = vrot.lane.b32.xlu1 %v2662_v26, %s2523_s4  ;;  %v2287_v40 = vadd.f32 -16.658485, %v1333_v37  ;;  %v1338_v47 = vmul.f32 16.658485, %v2677_v35  ;;  %v1354_v51 = vmul.f32 16.658485, %v2685_v39 }
  0xea   : > { %v2690_v43 = vpop.f32.mrf.mxu0  ;;  %v2694_v46 = vpop.f32.mrf.mxu1  ;;  %v2303_v52 = vadd.f32 -16.658485, %v1349_v50 }
  0xeb   : > { %3743 = vst [vmem:[#allocation5_spill] sm:$0xff] %v2690_v43  ;;  %3744 = vst [vmem:[#allocation6_spill] sm:$0xff] %v2694_v46  ;;  %v2292_v49 = vadd.f32 -16.658485, %v1338_v47  ;;  %v2308_v53 = vadd.f32 -16.658485, %v1354_v51 }
  0xec   : > { %v2692_v45 = vpop.f32.mrf.mxu0  ;;  %v2699_v48 = vpop.f32.mrf.mxu1  ;;  %v1336_v57 = vmul.f32 16.658485, %v2690_v43  ;;  %v1352_v60 = vmul.f32 16.658485, %v2694_v46 }
  0xed   : > { %1411 = vperm.xlu1 %2434, %v2288_v27   ;;  %526 = vrot.lane.b32.xlu0 %v2670_v30, %s2523_s4  ;;  %3745 = vst [vmem:[#allocation7_spill] sm:$0xff] %v2699_v48  ;;  %v1339_v58 = vmul.f32 16.658485, %v2692_v45  ;;  %v1355_v63 = vmul.f32 16.658485, %v2699_v48 }
  0xee   : > { %v2709_v54 = vpop.f32.mrf.mxu0  ;;  %v2717_v56 = vpop.f32.mrf.mxu1  ;;  %v2290_v61 = vadd.f32 -16.658485, %v1336_v57  ;;  %v2306_v0 = vadd.f32 -16.658485, %v1352_v60 }
  0xef   : > { %3746 = vst [vmem:[#allocation8_spill] sm:$0xff] %v2709_v54  ;;  %3748 = vst [vmem:[#allocation10_spill] sm:$0xff] %v2717_v56  ;;  %v2293_v62 = vadd.f32 -16.658485, %v1339_v58  ;;  %v2309_v1 = vadd.f32 -16.658485, %v1355_v63 }
  0xf0   : > { %v2711_v55 = vpop.f32.mrf.mxu0  ;;  %v2721_v59 = vpop.f32.mrf.mxu1  ;;  %v1337_v5 = vmul.f32 16.658485, %v2709_v54  ;;  %v1353_v8 = vmul.f32 16.658485, %v2717_v56 }
  0xf1   : > { %1491 = vperm.xlu1 %2434, %v2304_v31   ;;  %1401 = vperm.xlu0 %2435, %v2286_v32   ;;  %3747 = vst [vmem:[#allocation9_spill] sm:$0xff] %v2711_v55  ;;  %3749 = vst [vmem:[#allocation11_spill] sm:$0xff] %v2721_v59  ;;  %v1342_v6 = vmul.f32 16.658485, %v2711_v55  ;;  %v1358_v11 = vmul.f32 16.658485, %v2721_v59 }
  0xf2   : > { %v2729_v2 = vpop.f32.mrf.mxu0  ;;  %v2733_v4 = vpop.f32.mrf.mxu1  ;;  %v2291_v9 = vadd.f32 -16.658485, %v1337_v5  ;;  %v2307_v12 = vadd.f32 -16.658485, %v1353_v8 }
  0xf3   : > { %3750 = vst [vmem:[#allocation12_spill] sm:$0xff] %v2733_v4  ;;  %v2296_v10 = vadd.f32 -16.658485, %v1342_v6  ;;  %v2312_v13 = vadd.f32 -16.658485, %v1358_v11 }
  0xf4   : > { %v2731_v3 = vpop.f32.mrf.mxu0  ;;  %v2741_v7 = vpop.f32.mrf.mxu1  ;;  %v1340_v17 = vmul.f32 16.658485, %v2729_v2  ;;  %v1356_v27 = vmul.f32 16.658485, %v2733_v4 }
  0xf5   : > { %558 = vrot.lane.b32.xlu1 %v2675_v34, %s2523_s4  ;;  %536 = vrot.lane.b32.xlu0 %v2677_v35, %s2523_s4  ;;  %v1343_v18 = vmul.f32 16.658485, %v2731_v3  ;;  %v1359_v31 = vmul.f32 16.658485, %v2741_v7 }
  0xf6   : > { %v2749_v14 = vpop.f32.mrf.mxu0  ;;  %v2757_v16 = vpop.f32.mrf.mxu1  ;;  %v2294_v28 = vadd.f32 -16.658485, %v1340_v17  ;;  %v2310_v32 = vadd.f32 -16.658485, %v1356_v27 }
  0xf7   : > { %3751 = vst [vmem:[#allocation13_spill] sm:$0xff] %v2749_v14  ;;  %3753 = vst [vmem:[#allocation15_spill] sm:$0xff] %v2757_v16  ;;  %v2297_v29 = vadd.f32 -16.658485, %v1343_v18  ;;  %v2313_v33 = vadd.f32 -16.658485, %v1359_v31 }
  0xf8   : > { %v2751_v15 = vpop.f32.mrf.mxu0  ;;  %v2761_v25 = vpop.f32.mrf.mxu1  ;;  %v2524_v31 = vmov 49  }
  0xf9   : > { %1481 = vperm.xlu1 %2434, %v2302_v36   ;;  %568 = vrot.lane.b32.xlu0 %v2685_v39, %s2523_s4  ;;  %3752 = vst [vmem:[#allocation14_spill] sm:$0xff] %v2751_v15  ;;  %3754 = vst [vmem:[#allocation16_spill] sm:$0xff] %v2761_v25  ;;  %v1362_v50 = vmul.f32 16.658485, %v2761_v25 }
  0xfa   : > { %v2769_v36 = vpop.f32.mrf.mxu0  ;;  %v2773_v38 = vpop.f32.mrf.mxu1 }
  0xfb   : > { %3755 = vst [vmem:[#allocation17_spill] sm:$0xff] %v2773_v38  ;;  %v1360_v6 = vmul.f32 16.658485, %v2773_v38 }
  0xfc   : > { %v2771_v37 = vpop.f32.mrf.mxu0  ;;  %v2781_v42 = vpop.f32.mrf.mxu1 }
  0xfd   : > { %1406 = vperm.xlu1 %2434, %v2287_v40   ;;  %1416 = vperm.xlu0 %2435, %v2289_v41   ;;  %v1341_v40 = vmul.f32 16.658485, %v2749_v14  ;;  %v1346_v41 = vmul.f32 16.658485, %v2751_v15  ;;  %v1363_v58 = vmul.f32 16.658485, %v2781_v42 }
  0xfe   : > { %v2791_v60 = vpop.f32.mrf.mxu0 }
  0xff   : > { %v2295_v47 = vadd.f32 -16.658485, %v1341_v40  ;;  %3756 = vst [vmem:[#allocation18_spill] sm:$0xff] %v2791_v60  ;;  %v1345_v63 = vmul.f32 16.658485, %v2791_v60 }
 0x101   : > { %1496 = vperm.xlu0 %2435, %v2305_v44   ;;  %538 = vrot.lane.b32.xlu1 %v2692_v45, %s2523_s4  ;;  %v1357_v44 = vmul.f32 16.658485, %v2757_v16 }
 0x103   : > { %v2311_v51 = vadd.f32 -16.658485, %v1357_v44 }
 0x105   : > { %532 = vrot.lane.b32.xlu0 %v2690_v43, %s2523_s4  ;;  %570 = vrot.lane.b32.xlu1 %v2699_v48, %s2523_s4 }
 0x109   : > { %564 = vrot.lane.b32.xlu0 %v2694_v46, %s2523_s4  ;;  %1431 = vperm.xlu1 %2434, %v2292_v49   ;;  %v2300_v49 = vadd.f32 -16.658485, %v1346_v41 }
 0x10d   : > { %1486 = vperm.xlu0 %2435, %v2303_v52   ;;  %1511 = vperm.xlu1 %2434, %v2308_v53   ;;  %v2316_v52 = vadd.f32 -16.658485, %v1362_v50  ;;  %v1347_v53 = vmul.f32 16.658485, %v2771_v37 }
 0x10f   : > { %v2301_v57 = vadd.f32 -16.658485, %v1347_v53 }
 0x111   : > { %534 = vrot.lane.b32.xlu1 %v2709_v54, %s2523_s4  ;;  %544 = vrot.lane.b32.xlu0 %v2711_v55, %s2523_s4 }
 0x115   : > { %566 = vrot.lane.b32.xlu1 %v2717_v56, %s2523_s4  ;;  %576 = vrot.lane.b32.xlu0 %v2721_v59, %s2523_s4 }
 0x119   : > { %1421 = vperm.xlu1 %2434, %v2290_v61   ;;  %1436 = vperm.xlu0 %2435, %v2293_v62   ;;  %v2317_v61 = vadd.f32 -16.658485, %v1363_v58  ;;  %v1344_v62 = vmul.f32 16.658485, %v2769_v36 }
 0x11b   : > { %v2298_v8 = vadd.f32 -16.658485, %v1344_v62 }
 0x11d   : > { %1501 = vperm.xlu1 %2434, %v2306_v0   ;;  %1516 = vperm.xlu0 %2435, %v2309_v1   ;;  %v2797_v0 = vpop.f32.mrf.mxu1 }
 0x11e   : > { %3757 = vst [vmem:[#allocation19_spill] sm:$0xff] %v2797_v0 }
 0x121   : > { %540 = vrot.lane.b32.xlu0 %v2729_v2, %s2523_s4  ;;  %546 = vrot.lane.b32.xlu1 %v2731_v3, %s2523_s4 }
 0x125   : > { %572 = vrot.lane.b32.xlu0 %v2733_v4, %s2523_s4  ;;  %578 = vrot.lane.b32.xlu1 %v2741_v7, %s2523_s4 }
 0x129   : > { %1426 = vperm.xlu0 %2435, %v2291_v9   ;;  %1451 = vperm.xlu1 %2434, %v2296_v10   ;;  %v2299_v9 = vadd.f32 -16.658485, %v1345_v63  ;;  %v1361_v10 = vmul.f32 16.658485, %v2797_v0 }
 0x12d   : > { %1506 = vperm.xlu0 %2435, %v2307_v12   ;;  %1531 = vperm.xlu1 %2434, %v2312_v13   ;;  %v2314_v12 = vadd.f32 -16.658485, %v1360_v6  ;;  %v2315_v13 = vadd.f32 -16.658485, %v1361_v10 }
 0x131   : > { %542 = vrot.lane.b32.xlu1 %v2749_v14, %s2523_s4  ;;  %552 = vrot.lane.b32.xlu0 %v2751_v15, %s2523_s4 }
 0x135   : > { %574 = vrot.lane.b32.xlu1 %v2757_v16, %s2523_s4  ;;  %584 = vrot.lane.b32.xlu0 %v2761_v25, %s2523_s4 }
 0x139   : > { %1441 = vperm.xlu1 %2434, %v2294_v28   ;;  %1456 = vperm.xlu0 %2435, %v2297_v29  }
 0x13d   : > { %1521 = vperm.xlu1 %2434, %v2310_v32   ;;  %1536 = vperm.xlu0 %2435, %v2313_v33  }
 0x141   : > { %548 = vrot.lane.b32.xlu0 %v2769_v36, %s2523_s4  ;;  %554 = vrot.lane.b32.xlu1 %v2771_v37, %s2523_s4 }
 0x145   : > { %580 = vrot.lane.b32.xlu0 %v2773_v38, %s2523_s4  ;;  %586 = vrot.lane.b32.xlu1 %v2781_v42, %s2523_s4 }
 0x149   : > { %1446 = vperm.xlu0 %2435, %v2295_v47   ;;  %1471 = vperm.xlu1 %2434, %v2300_v49  }
 0x14d   : > { %1526 = vperm.xlu0 %2435, %v2311_v51   ;;  %1551 = vperm.xlu1 %2434, %v2316_v52  }
 0x151   : > { %1476 = vperm.xlu0 %2435, %v2301_v57   ;;  %550 = vrot.lane.b32.xlu1 %v2791_v60, %s2523_s4 }
 0x153   : > { %v529_v1 = vpop.permute.xlu1 %528  ;;  %v561_v5 = vpop.permute.xlu0 %560 }
 0x154   : > { %v622_v18 = vmax.f32 %v2643_v20, %v529_v1  ;;  %v638_v32 = vmax.f32 %v2645_v21, %v561_v5 }
 0x155   : > { %1556 = vperm.xlu0 %2435, %v2317_v61   ;;  %582 = vrot.lane.b32.xlu1 %v2797_v0, %s2523_s4 }
 0x156   : > { %v1075_v33 = vmul.f32 15.396523, %v622_v18  ;;  %v1091_v50 = vmul.f32 15.396523, %v638_v32 }
 0x157   : > { %v531_v11 = vpop.permute.xlu1 %530  ;;  %v525_v17 = vpop.permute.xlu0 %524 }
 0x158   : > { %v623_v27 = vmax.f32 %v2655_v24, %v531_v11  ;;  %v620_v41 = vmax.f32 %v2651_v22, %v525_v17  ;;  %v2256_v44 = vadd.f32 -15.396523, %v1075_v33  ;;  %v2272_v61 = vadd.f32 -15.396523, %v1091_v50 }
 0x159   : > { %1461 = vperm.xlu1 %2434, %v2298_v8   ;;  %1466 = vperm.xlu0 %2435, %v2299_v9  }
 0x15a   : > { %v1073_v1 = vmul.f32 15.396523, %v620_v41  ;;  %v1076_v10 = vmul.f32 15.396523, %v623_v27 }
 0x15b   : > { %v563_v28 = vpop.permute.xlu1 %562  ;;  %v557_v29 = vpop.permute.xlu0 %556 }
 0x15c   : > { %v639_v40 = vmax.f32 %v2662_v26, %v563_v28  ;;  %v636_v51 = vmax.f32 %v2653_v23, %v557_v29  ;;  %v2254_v11 = vadd.f32 -15.396523, %v1073_v1  ;;  %v2257_v28 = vadd.f32 -15.396523, %v1076_v10 }
 0x15d   : > { %1541 = vperm.xlu1 %2434, %v2314_v12   ;;  %1546 = vperm.xlu0 %2435, %v2315_v13  }
 0x15e   : > { %v1089_v58 = vmul.f32 15.396523, %v636_v51 }
 0x15f   : > { %v527_v47 = vpop.permute.xlu0 %526 }
 0x160   : > { %v621_v52 = vmax.f32 %v2670_v30, %v527_v47  ;;  %v2270_v6 = vadd.f32 -15.396523, %v1089_v58 }
 0x161   : > { %690 = vrot.lane.b32.xlu1 %v623_v27, %s2523_s4  ;;  %688 = vrot.lane.b32.xlu0 %v622_v18, %s2523_s4  ;;  %v1092_v18 = vmul.f32 15.396523, %v639_v40 }
 0x162   : > { %2436 = vset.pattern.permute.xlu1 %v2524_v31  ;;  %2437 = vset.pattern.permute.xlu0 %v2524_v31  ;;  %v1074_v58 = vmul.f32 15.396523, %v621_v52 }
 0x163   : > { %v2273_v33 = vadd.f32 -15.396523, %v1092_v18 }
 0x165   : > { %722 = vrot.lane.b32.xlu1 %v639_v40, %s2523_s4  ;;  %720 = vrot.lane.b32.xlu0 %v638_v32, %s2523_s4 }
 0x168   : > { %v2812_v49 = vpop.permute.xlu1 %1411 }
 0x169   : > { %1152 = vperm.xlu1 %2436, %v2256_v44   ;;  %684 = vrot.lane.b32.xlu0 %v620_v41, %s2523_s4 }
 0x16c   : > { %v2817_v53 = vpop.permute.xlu1 %1491  ;;  %v2819_v57 = vpop.permute.xlu0 %1401 }
 0x16d   : > { %686 = vrot.lane.b32.xlu1 %v621_v52, %s2523_s4  ;;  %716 = vrot.lane.b32.xlu0 %v636_v51, %s2523_s4 }
 0x170   : > { %v559_v62 = vpop.permute.xlu1 %558  ;;  %v537_v63 = vpop.permute.xlu0 %536 }
 0x171   : > { %v637_v5 = vmax.f32 %v2675_v34, %v559_v62  ;;  %1232 = vperm.xlu0 %2437, %v2272_v61   ;;  %v626_v12 = vmax.f32 %v2677_v35, %v537_v63 }
 0x173   : > { %718 = vrot.lane.b32.xlu1 %v637_v5, %s2523_s4  ;;  %v1090_v27 = vmul.f32 15.396523, %v637_v5  ;;  %v1079_v5 = vmul.f32 15.396523, %v626_v12 }
 0x174   : > { %v2825_v8 = vpop.permute.xlu1 %1481  ;;  %v569_v9 = vpop.permute.xlu0 %568 }
 0x175   : > { %1222 = vperm.xlu0 %2437, %v2270_v6   ;;  %v642_v29 = vmax.f32 %v2685_v39, %v569_v9  ;;  %v2271_v50 = vadd.f32 -15.396523, %v1090_v27  ;;  %v2255_v9 = vadd.f32 -15.396523, %v1074_v58 }
 0x177   : > { %1142 = vperm.xlu1 %2436, %v2254_v11   ;;  %v1095_v11 = vmul.f32 15.396523, %v642_v29 }
 0x178   : > { %v2828_v13 = vpop.permute.xlu1 %1406  ;;  %v2830_v17 = vpop.permute.xlu0 %1416 }
 0x179   : > { %696 = vrot.lane.b32.xlu0 %v626_v12, %s2523_s4 }
 0x17b   : > { %1157 = vperm.xlu1 %2436, %v2257_v28   ;;  %v2260_v28 = vadd.f32 -15.396523, %v1079_v5 }
 0x17c   : > { %v2834_v31 = vpop.permute.xlu0 %1496  ;;  %v539_v32 = vpop.permute.xlu1 %538 }
 0x17d   : > { %728 = vrot.lane.b32.xlu0 %v642_v29, %s2523_s4  ;;  %v627_v61 = vmax.f32 %v2692_v45, %v539_v32 }
 0x17f   : > { %1237 = vperm.xlu1 %2436, %v2273_v33   ;;  %v1080_v32 = vmul.f32 15.396523, %v627_v61 }
 0x180   : > { %v533_v41 = vpop.permute.xlu0 %532  ;;  %v571_v44 = vpop.permute.xlu1 %570 }
 0x181   : > { %v624_v47 = vmax.f32 %v2690_v43, %v533_v41  ;;  %v643_v6 = vmax.f32 %v2699_v48, %v571_v44  ;;  %v2276_v44 = vadd.f32 -15.396523, %v1095_v11  ;;  %v2261_v29 = vadd.f32 -15.396523, %v1080_v32 }
 0x183   : > { %1227 = vperm.xlu1 %2436, %v2271_v50   ;;  %692 = vrot.lane.b32.xlu0 %v624_v47, %s2523_s4  ;;  %v1077_v41 = vmul.f32 15.396523, %v624_v47  ;;  %v1096_v58 = vmul.f32 15.396523, %v643_v6 }
 0x184   : > { %v565_v40 = vpop.permute.xlu0 %564  ;;  %v2839_v51 = vpop.permute.xlu1 %1431 }
 0x185   : > { %v640_v62 = vmax.f32 %v2694_v46, %v565_v40 }
 0x187   : > { %698 = vrot.lane.b32.xlu1 %v627_v61, %s2523_s4  ;;  %724 = vrot.lane.b32.xlu0 %v640_v62, %s2523_s4  ;;  %v1093_v5 = vmul.f32 15.396523, %v640_v62 }
 0x188   : > { %v2845_v63 = vpop.permute.xlu0 %1486  ;;  %v2847_v1 = vpop.permute.xlu1 %1511 }
 0x189   : > { %v2274_v11 = vadd.f32 -15.396523, %v1093_v5 }
 0x18b   : > { %730 = vrot.lane.b32.xlu1 %v643_v6, %s2523_s4  ;;  %1147 = vperm.xlu0 %2437, %v2255_v9   ;;  %v2258_v9 = vadd.f32 -15.396523, %v1077_v41 }
 0x18c   : > { %v535_v52 = vpop.permute.xlu1 %534  ;;  %v545_v10 = vpop.permute.xlu0 %544 }
 0x18d   : > { %v625_v18 = vmax.f32 %v2709_v54, %v535_v52  ;;  %v630_v19 = vmax.f32 %v2711_v55, %v545_v10 }
 0x18f   : > { %694 = vrot.lane.b32.xlu1 %v625_v18, %s2523_s4  ;;  %1172 = vperm.xlu0 %2437, %v2260_v28   ;;  %v1078_v47 = vmul.f32 15.396523, %v625_v18  ;;  %v2277_v28 = vadd.f32 -15.396523, %v1096_v58 }
 0x190   : > { %v567_v27 = vpop.permute.xlu1 %566  ;;  %v577_v33 = vpop.permute.xlu0 %576 }
 0x191   : > { %v641_v12 = vmax.f32 %v2717_v56, %v567_v27  ;;  %v2259_v32 = vadd.f32 -15.396523, %v1078_v47  ;;  %v646_v41 = vmax.f32 %v2721_v59, %v577_v33  ;;  %v1083_v33 = vmul.f32 15.396523, %v630_v19 }
 0x193   : > { %726 = vrot.lane.b32.xlu1 %v641_v12, %s2523_s4  ;;  %1252 = vperm.xlu0 %2437, %v2276_v44  }
 0x194   : > { %v2855_v50 = vpop.permute.xlu1 %1421  ;;  %v2857_v40 = vpop.permute.xlu0 %1436 }
 0x195   : > { %3758 = vst [vmem:[#allocation20_spill] sm:$0xff] %v2855_v50  ;;  %3759 = vst [vmem:[#allocation21_spill] sm:$0xff] %v2857_v40  ;;  %v1094_v50 = vmul.f32 15.396523, %v641_v12 }
 0x197   : > { %1177 = vperm.xlu1 %2436, %v2261_v29   ;;  %1162 = vperm.xlu0 %2437, %v2258_v9   ;;  %v2275_v29 = vadd.f32 -15.396523, %v1094_v50 }
 0x198   : > { %v2859_v61 = vpop.permute.xlu1 %1501  ;;  %v2861_v52 = vpop.permute.xlu0 %1516 }
 0x199   : > { %3760 = vst [vmem:[#allocation22_spill] sm:$0xff] %v2859_v61  ;;  %3761 = vst [vmem:[#allocation23_spill] sm:$0xff] %v2861_v52 }
 0x19b   : > { %1257 = vperm.xlu1 %2436, %v2277_v28   ;;  %1242 = vperm.xlu0 %2437, %v2274_v11  }
 0x19c   : > { %v541_v27 = vpop.permute.xlu0 %540  ;;  %v547_v44 = vpop.permute.xlu1 %546 }
 0x19d   : > { %v628_v5 = vmax.f32 %v2729_v2, %v541_v27  ;;  %v631_v10 = vmax.f32 %v2731_v3, %v547_v44  ;;  %v2264_v27 = vadd.f32 -15.396523, %v1083_v33  ;;  %v1099_v44 = vmul.f32 15.396523, %v646_v41 }
 0x19f   : > { %1167 = vperm.xlu1 %2436, %v2259_v32   ;;  %704 = vrot.lane.b32.xlu0 %v630_v19, %s2523_s4 }
 0x1a0   : > { %v573_v62 = vpop.permute.xlu0 %572  ;;  %v579_v6 = vpop.permute.xlu1 %578 }
 0x1a1   : > { %v644_v50 = vmax.f32 %v2733_v4, %v573_v62  ;;  %v647_v47 = vmax.f32 %v2741_v7, %v579_v6  ;;  %v1084_v62 = vmul.f32 15.396523, %v631_v10 }
 0x1a3   : > { %1247 = vperm.xlu1 %2436, %v2275_v29   ;;  %736 = vrot.lane.b32.xlu0 %v646_v41, %s2523_s4  ;;  %v1081_v29 = vmul.f32 15.396523, %v628_v5  ;;  %v2265_v41 = vadd.f32 -15.396523, %v1084_v62  ;;  %v1100_v61 = vmul.f32 15.396523, %v647_v47 }
 0x1a4   : > { %v2867_v18 = vpop.permute.xlu0 %1426  ;;  %v2869_v58 = vpop.permute.xlu1 %1451 }
 0x1a5   : > { %3762 = vst [vmem:[#allocation24_spill] sm:$0xff] %v2867_v18  ;;  %3763 = vst [vmem:[#allocation25_spill] sm:$0xff] %v2869_v58  ;;  %v2280_v58 = vadd.f32 -15.396523, %v1099_v44  ;;  %v2281_v44 = vadd.f32 -15.396523, %v1100_v61 }
 0x1a7   : > { %706 = vrot.lane.b32.xlu1 %v631_v10, %s2523_s4  ;;  %700 = vrot.lane.b32.xlu0 %v628_v5, %s2523_s4 }
 0x1a8   : > { %v2875_v12 = vpop.permute.xlu0 %1506  ;;  %v2877_v9 = vpop.permute.xlu1 %1531 }
 0x1a9   : > { %3764 = vst [vmem:[#allocation26_spill] sm:$0xff] %v2875_v12  ;;  %3765 = vst [vmem:[#allocation27_spill] sm:$0xff] %v2877_v9  ;;  %v2262_v12 = vadd.f32 -15.396523, %v1081_v29 }
 0x1ab   : > { %738 = vrot.lane.b32.xlu1 %v647_v47, %s2523_s4  ;;  %732 = vrot.lane.b32.xlu0 %v644_v50, %s2523_s4 }
 0x1ac   : > { %v543_v28 = vpop.permute.xlu1 %542  ;;  %v553_v11 = vpop.permute.xlu0 %552 }
 0x1ad   : > { %v629_v32 = vmax.f32 %v2749_v14, %v543_v28  ;;  %v1097_v28 = vmul.f32 15.396523, %v644_v50 }
 0x1af   : > { %702 = vrot.lane.b32.xlu1 %v629_v32, %s2523_s4  ;;  %1192 = vperm.xlu0 %2437, %v2264_v27   ;;  %v2278_v10 = vadd.f32 -15.396523, %v1097_v28 }
 0x1b0   : > { %v575_v9 = vpop.permute.xlu1 %574  ;;  %v585_v19 = vpop.permute.xlu0 %584 }
 0x1b1   : > { %v645_v6 = vmax.f32 %v2757_v16, %v575_v9  ;;  %v1082_v9 = vmul.f32 15.396523, %v629_v32  ;;  %v650_v62 = vmax.f32 %v2761_v25, %v585_v19 }
 0x1b3   : > { %734 = vrot.lane.b32.xlu1 %v645_v6, %s2523_s4  ;;  %1272 = vperm.xlu0 %2437, %v2280_v58   ;;  %v2263_v52 = vadd.f32 -15.396523, %v1082_v9 }
 0x1b4   : > { %v2887_v18 = vpop.permute.xlu1 %1441  ;;  %v2889_v33 = vpop.permute.xlu0 %1456 }
 0x1b5   : > { %3766 = vst [vmem:[#allocation28_spill] sm:$0xff] %v2887_v18  ;;  %3767 = vst [vmem:[#allocation29_spill] sm:$0xff] %v2889_v33  ;;  %v634_v18 = vmax.f32 %v2751_v15, %v553_v11  ;;  %v1098_v33 = vmul.f32 15.396523, %v645_v6 }
 0x1b7   : > { %1197 = vperm.xlu1 %2436, %v2265_v41   ;;  %1182 = vperm.xlu0 %2437, %v2262_v12   ;;  %v2279_v47 = vadd.f32 -15.396523, %v1098_v33  ;;  %v1087_v19 = vmul.f32 15.396523, %v634_v18 }
 0x1b8   : > { %v2891_v5 = vpop.permute.xlu1 %1521  ;;  %v2893_v27 = vpop.permute.xlu0 %1536 }
 0x1b9   : > { %3768 = vst [vmem:[#allocation30_spill] sm:$0xff] %v2891_v5  ;;  %3769 = vst [vmem:[#allocation31_spill] sm:$0xff] %v2893_v27  ;;  %v2268_v9 = vadd.f32 -15.396523, %v1087_v19 }
 0x1bb   : > { %1277 = vperm.xlu1 %2436, %v2281_v44   ;;  %1262 = vperm.xlu0 %2437, %v2278_v10  }
 0x1bc   : > { %v549_v58 = vpop.permute.xlu0 %548  ;;  %v555_v29 = vpop.permute.xlu1 %554 }
 0x1bd   : > { %v632_v41 = vmax.f32 %v2769_v36, %v549_v58  ;;  %v635_v11 = vmax.f32 %v2771_v37, %v555_v29  ;;  %v1103_v58 = vmul.f32 15.396523, %v650_v62 }
 0x1bf   : > { %1187 = vperm.xlu1 %2436, %v2263_v52   ;;  %712 = vrot.lane.b32.xlu0 %v634_v18, %s2523_s4 }
 0x1c0   : > { %v581_v50 = vpop.permute.xlu0 %580  ;;  %v587_v12 = vpop.permute.xlu1 %586 }
 0x1c1   : > { %v648_v33 = vmax.f32 %v2773_v38, %v581_v50  ;;  %v651_v28 = vmax.f32 %v2781_v42, %v587_v12  ;;  %v1088_v12 = vmul.f32 15.396523, %v635_v11 }
 0x1c3   : > { %1267 = vperm.xlu1 %2436, %v2279_v47   ;;  %744 = vrot.lane.b32.xlu0 %v650_v62, %s2523_s4  ;;  %v1085_v47 = vmul.f32 15.396523, %v632_v41  ;;  %v2269_v19 = vadd.f32 -15.396523, %v1088_v12 }
 0x1c4   : > { %v2899_v61 = vpop.permute.xlu0 %1446  ;;  %v2901_v32 = vpop.permute.xlu1 %1471 }
 0x1c5   : > { %3770 = vst [vmem:[#allocation32_spill] sm:$0xff] %v2899_v61  ;;  %3771 = vst [vmem:[#allocation33_spill] sm:$0xff] %v2901_v32  ;;  %v1104_v61 = vmul.f32 15.396523, %v651_v28 }
 0x1c7   : > { %714 = vrot.lane.b32.xlu1 %v635_v11, %s2523_s4  ;;  %708 = vrot.lane.b32.xlu0 %v632_v41, %s2523_s4 }
 0x1c8   : > { %v2907_v52 = vpop.permute.xlu0 %1526  ;;  %v2909_v6 = vpop.permute.xlu1 %1551 }
 0x1c9   : > { %3772 = vst [vmem:[#allocation34_spill] sm:$0xff] %v2907_v52  ;;  %3773 = vst [vmem:[#allocation35_spill] sm:$0xff] %v2909_v6  ;;  %v2284_v6 = vadd.f32 -15.396523, %v1103_v58  ;;  %v2285_v58 = vadd.f32 -15.396523, %v1104_v61 }
 0x1cb   : > { %746 = vrot.lane.b32.xlu1 %v651_v28, %s2523_s4  ;;  %740 = vrot.lane.b32.xlu0 %v648_v33, %s2523_s4 }
 0x1cc   : > { %v2915_v10 = vpop.permute.xlu0 %1476  ;;  %v551_v44 = vpop.permute.xlu1 %550 }
 0x1cd   : > { %3774 = vst [vmem:[#allocation36_spill] sm:$0xff] %v2915_v10  ;;  %v633_v29 = vmax.f32 %v2791_v60, %v551_v44  ;;  %v2266_v10 = vadd.f32 -15.396523, %v1085_v47  ;;  %v1101_v44 = vmul.f32 15.396523, %v648_v33  ;;  %v2525_v33 = vmov 48  }
 0x1cf   : > { %710 = vrot.lane.b32.xlu1 %v633_v29, %s2523_s4  ;;  %1212 = vperm.xlu0 %2437, %v2268_v9   ;;  %v2282_v11 = vadd.f32 -15.396523, %v1101_v44 }
 0x1d0   : > { %v2919_v18 = vpop.permute.xlu0 %1556  ;;  %v583_v50 = vpop.permute.xlu1 %582 }
 0x1d1   : > { %3775 = vst [vmem:[#allocation37_spill] sm:$0xff] %v2919_v18  ;;  %v649_v32 = vmax.f32 %v2797_v0, %v583_v50  ;;  %v1086_v50 = vmul.f32 15.396523, %v633_v29 }
 0x1d3   : > { %742 = vrot.lane.b32.xlu1 %v649_v32, %s2523_s4  ;;  %1292 = vperm.xlu0 %2437, %v2284_v6   ;;  %v2267_v18 = vadd.f32 -15.396523, %v1086_v50 }
 0x1d4   : > { %v2923_v52 = vpop.permute.xlu1 %1461  ;;  %v2925_v62 = vpop.permute.xlu0 %1466 }
 0x1d5   : > { %3776 = vst [vmem:[#allocation38_spill] sm:$0xff] %v2923_v52  ;;  %3777 = vst [vmem:[#allocation39_spill] sm:$0xff] %v2925_v62  ;;  %v1102_v52 = vmul.f32 15.396523, %v649_v32 }
 0x1d7   : > { %1217 = vperm.xlu1 %2436, %v2269_v19   ;;  %1202 = vperm.xlu0 %2437, %v2266_v10   ;;  %v2283_v12 = vadd.f32 -15.396523, %v1102_v52 }
 0x1d8   : > { %v2927_v41 = vpop.permute.xlu1 %1541  ;;  %v2929_v9 = vpop.permute.xlu0 %1546 }
 0x1d9   : > { %3778 = vst [vmem:[#allocation40_spill] sm:$0xff] %v2927_v41  ;;  %3779 = vst [vmem:[#allocation41_spill] sm:$0xff] %v2929_v9 }
 0x1db   : > { %1297 = vperm.xlu1 %2436, %v2285_v58   ;;  %1282 = vperm.xlu0 %2437, %v2282_v11  }
 0x1dc   : > { %v691_v6 = vpop.permute.xlu1 %690  ;;  %v689_v47 = vpop.permute.xlu0 %688 }
 0x1dd   : > { %v782_v62 = vmax.f32 %v2643_v20, %v689_v47  ;;  %v783_v44 = vmax.f32 %v2655_v24, %v691_v6 }
 0x1df   : > { %1207 = vperm.xlu1 %2436, %v2267_v18   ;;  %2439 = vset.pattern.permute.xlu0 %v2525_v33  ;;  %v816_v19 = vmul.f32 16.77872, %v782_v62  ;;  %v817_v41 = vmul.f32 16.77872, %v783_v44 }
 0x1e0   : > { %v723_v28 = vpop.permute.xlu1 %722  ;;  %v721_v10 = vpop.permute.xlu0 %720 }
 0x1e1   : > { %v798_v9 = vmax.f32 %v2645_v21, %v721_v10  ;;  %v2224_v32 = vadd.f32 -16.77872, %v816_v19  ;;  %v799_v52 = vmax.f32 %v2662_v26, %v723_v28 }
 0x1e3   : > { %1287 = vperm.xlu1 %2436, %v2283_v12   ;;  %v832_v58 = vmul.f32 16.77872, %v798_v9  ;;  %v2225_v9 = vadd.f32 -16.77872, %v817_v41 }
 0x1e4   : > { %v2933_v61 = vpop.permute.xlu1 %1152  ;;  %v685_v29 = vpop.permute.xlu0 %684 }
 0x1e5   : > { %v780_v11 = vmax.f32 %v2651_v22, %v685_v29  ;;  %v2240_v12 = vadd.f32 -16.77872, %v832_v58 }
 0x1e7   : > { %v814_v50 = vmul.f32 16.77872, %v780_v11  ;;  %2438 = vset.pattern.permute.xlu1 %v2525_v33  ;;  %v833_v33 = vmul.f32 16.77872, %v799_v52 }
 0x1e8   : > { %v687_v18 = vpop.permute.xlu1 %686  ;;  %893 = vperm.xlu1 %2438, %v2224_v32   ;;  %v717_v47 = vpop.permute.xlu0 %716 }
 0x1e9   : > { %v2222_v62 = vadd.f32 -16.77872, %v814_v50  ;;  %v796_v10 = vmax.f32 %v2653_v23, %v717_v47  ;;  %v781_v5 = vmax.f32 %v2670_v30, %v687_v18  ;;  %v2241_v32 = vadd.f32 -16.77872, %v833_v33 }
 0x1eb   : > { %v830_v27 = vmul.f32 16.77872, %v796_v10  ;;  %883 = vperm.xlu0 %2439, %v2222_v62   ;;  %v815_v44 = vmul.f32 16.77872, %v781_v5 }
 0x1ec   : > { %v719_v6 = vpop.permute.xlu1 %718  ;;  %973 = vperm.xlu1 %2438, %v2240_v12   ;;  %v2940_v19 = vpop.permute.xlu0 %1232 }
 0x1ed   : > { %v2238_v29 = vadd.f32 -16.77872, %v830_v27  ;;  %v797_v11 = vmax.f32 %v2675_v34, %v719_v6  ;;  %v2223_v50 = vadd.f32 -16.77872, %v815_v44 }
 0x1ef   : > { %898 = vperm.xlu0 %2439, %v2225_v9   ;;  %v831_v58 = vmul.f32 16.77872, %v797_v11 }
 0x1f0   : > { %963 = vperm.xlu1 %2438, %v2238_v29   ;;  %v2943_v28 = vpop.permute.xlu0 %1222 }
 0x1f1   : > { %v2239_v62 = vadd.f32 -16.77872, %v831_v58 }
 0x1f2   : > { %v2945_v18 = vpop.permute.xlu1 %1142 }
 0x1f3   : > { %978 = vperm.xlu0 %2439, %v2241_v32  }
 0x1f4   : > { %888 = vperm.xlu1 %2438, %v2223_v50   ;;  %v697_v47 = vpop.permute.xlu0 %696 }
 0x1f5   : > { %v786_v41 = vmax.f32 %v2677_v35, %v697_v47 }
 0x1f6   : > { %v2948_v52 = vpop.permute.xlu1 %1157 }
 0x1f7   : > { %v820_v27 = vmul.f32 16.77872, %v786_v41  ;;  %968 = vperm.xlu0 %2439, %v2239_v62  }
 0x1f8   : > { %v729_v5 = vpop.permute.xlu0 %728 }
 0x1f9   : > { %v2228_v10 = vadd.f32 -16.77872, %v820_v27  ;;  %v802_v12 = vmax.f32 %v2685_v39, %v729_v5 }
 0x1fa   : > { %v2951_v6 = vpop.permute.xlu1 %1237 }
 0x1fb   : > { %v836_v9 = vmul.f32 16.77872, %v802_v12  ;;  %913 = vperm.xlu1 %2438, %v2228_v10  }
 0x1fc   : > { %v693_v33 = vpop.permute.xlu0 %692 }
 0x1fd   : > { %v2244_v29 = vadd.f32 -16.77872, %v836_v9  ;;  %v784_v11 = vmax.f32 %v2690_v43, %v693_v33 }
 0x1fe   : > { %v2954_v44 = vpop.permute.xlu1 %1227 }
 0x1ff   : > { %v818_v32 = vmul.f32 16.77872, %v784_v11  ;;  %993 = vperm.xlu1 %2438, %v2244_v29  }
 0x200   : > { %v725_v58 = vpop.permute.xlu0 %724 }
 0x201   : > { %v2226_v50 = vadd.f32 -16.77872, %v818_v32  ;;  %v800_v47 = vmax.f32 %v2694_v46, %v725_v58 }
 0x202   : > { %v699_v62 = vpop.permute.xlu1 %698 }
 0x203   : > { %v834_v41 = vmul.f32 16.77872, %v800_v47  ;;  %v787_v27 = vmax.f32 %v2692_v45, %v699_v62  ;;  %903 = vperm.xlu1 %2438, %v2226_v50  }
 0x205   : > { %v2242_v5 = vadd.f32 -16.77872, %v834_v41  ;;  %v821_v12 = vmul.f32 16.77872, %v787_v27 }
 0x206   : > { %v731_v10 = vpop.permute.xlu1 %730  ;;  %v2958_v40 = vpop.permute.xlu0 %1147 }
 0x207   : > { %v2229_v9 = vadd.f32 -16.77872, %v821_v12  ;;  %v803_v33 = vmax.f32 %v2699_v48, %v731_v10  ;;  %983 = vperm.xlu1 %2438, %v2242_v5  }
 0x209   : > { %v837_v11 = vmul.f32 16.77872, %v803_v33  ;;  %918 = vperm.xlu0 %2439, %v2229_v9  }
 0x20a   : > { %v695_v29 = vpop.permute.xlu1 %694  ;;  %v2961_v32 = vpop.permute.xlu0 %1172 }
 0x20b   : > { %v2245_v58 = vadd.f32 -16.77872, %v837_v11  ;;  %v785_v47 = vmax.f32 %v2709_v54, %v695_v29 }
 0x20d   : > { %v819_v46 = vmul.f32 16.77872, %v785_v47  ;;  %998 = vperm.xlu0 %2439, %v2245_v58  }
 0x20e   : > { %v727_v50 = vpop.permute.xlu1 %726  ;;  %v2964_v62 = vpop.permute.xlu0 %1252 }
 0x20f   : > { %v2227_v41 = vadd.f32 -16.77872, %v819_v46  ;;  %v801_v27 = vmax.f32 %v2717_v56, %v727_v50 }
 0x211   : > { %v835_v12 = vmul.f32 16.77872, %v801_v27  ;;  %908 = vperm.xlu0 %2439, %v2227_v41  }
 0x212   : > { %v2967_v10 = vpop.permute.xlu1 %1177  ;;  %v2969_v5 = vpop.permute.xlu0 %1162 }
 0x213   : > { %3780 = vst [vmem:[#allocation42_spill] sm:$0xff] %v2969_v5  ;;  %v2243_v9 = vadd.f32 -16.77872, %v835_v12 }
 0x215   : > { %988 = vperm.xlu0 %2439, %v2243_v9  }
 0x216   : > { %v2971_v33 = vpop.permute.xlu1 %1257  ;;  %v2973_v11 = vpop.permute.xlu0 %1242 }
 0x217   : > { %3781 = vst [vmem:[#allocation43_spill] sm:$0xff] %v2973_v11 }
 0x21a   : > { %v2975_v29 = vpop.permute.xlu1 %1167  ;;  %v705_v58 = vpop.permute.xlu0 %704 }
 0x21b   : > { %3782 = vst [vmem:[#allocation44_spill] sm:$0xff] %v2975_v29  ;;  %v790_v47 = vmax.f32 %v2711_v55, %v705_v58 }
 0x21d   : > { %v824_v46 = vmul.f32 16.77872, %v790_v47 }
 0x21e   : > { %v2978_v54 = vpop.permute.xlu1 %1247  ;;  %v737_v50 = vpop.permute.xlu0 %736 }
 0x21f   : > { %3783 = vst [vmem:[#allocation45_spill] sm:$0xff] %v2978_v54  ;;  %v2232_v41 = vadd.f32 -16.77872, %v824_v46  ;;  %v806_v27 = vmax.f32 %v2721_v59, %v737_v50 }
 0x221   : > { %v840_v56 = vmul.f32 16.77872, %v806_v27  ;;  %933 = vperm.xlu1 %2438, %v2232_v41  }
 0x222   : > { %v707_v12 = vpop.permute.xlu1 %706  ;;  %v701_v9 = vpop.permute.xlu0 %700 }
 0x223   : > { %v2248_v43 = vadd.f32 -16.77872, %v840_v56  ;;  %v791_v48 = vmax.f32 %v2731_v3, %v707_v12  ;;  %v788_v11 = vmax.f32 %v2729_v2, %v701_v9 }
 0x225   : > { %v825_v29 = vmul.f32 16.77872, %v791_v48  ;;  %v822_v5 = vmul.f32 16.77872, %v788_v11  ;;  %1013 = vperm.xlu1 %2438, %v2248_v43  }
 0x226   : > { %v739_v58 = vpop.permute.xlu1 %738  ;;  %v733_v47 = vpop.permute.xlu0 %732 }
 0x227   : > { %v2233_v55 = vadd.f32 -16.77872, %v825_v29  ;;  %v2230_v54 = vadd.f32 -16.77872, %v822_v5  ;;  %v807_v46 = vmax.f32 %v2741_v7, %v739_v58  ;;  %v804_v50 = vmax.f32 %v2733_v4, %v733_v47 }
 0x229   : > { %v841_v27 = vmul.f32 16.77872, %v807_v46  ;;  %v838_v41 = vmul.f32 16.77872, %v804_v50  ;;  %938 = vperm.xlu0 %2439, %v2233_v55   ;;  %923 = vperm.xlu1 %2438, %v2230_v54  }
 0x22a   : > { %v703_v56 = vpop.permute.xlu1 %702  ;;  %v2985_v59 = vpop.permute.xlu0 %1192 }
 0x22b   : > { %v2249_v12 = vadd.f32 -16.77872, %v841_v27  ;;  %v2246_v9 = vadd.f32 -16.77872, %v838_v41  ;;  %v789_v48 = vmax.f32 %v2749_v14, %v703_v56 }
 0x22d   : > { %v823_v43 = vmul.f32 16.77872, %v789_v48  ;;  %1018 = vperm.xlu0 %2439, %v2249_v12   ;;  %1003 = vperm.xlu1 %2438, %v2246_v9  }
 0x22e   : > { %v735_v11 = vpop.permute.xlu1 %734  ;;  %v2988_v5 = vpop.permute.xlu0 %1272 }
 0x22f   : > { %v2231_v29 = vadd.f32 -16.77872, %v823_v43  ;;  %v805_v58 = vmax.f32 %v2757_v16, %v735_v11 }
 0x231   : > { %v839_v47 = vmul.f32 16.77872, %v805_v58  ;;  %928 = vperm.xlu0 %2439, %v2231_v29  }
 0x232   : > { %v2991_v55 = vpop.permute.xlu1 %1197  ;;  %v2993_v54 = vpop.permute.xlu0 %1182 }
 0x233   : > { %v2247_v46 = vadd.f32 -16.77872, %v839_v47 }
 0x235   : > { %1008 = vperm.xlu0 %2439, %v2247_v46  }
 0x236   : > { %v2995_v50 = vpop.permute.xlu1 %1277  ;;  %v2997_v27 = vpop.permute.xlu0 %1262 }
 0x237   : > { %3784 = vst [vmem:[#allocation46_spill] sm:$0xff] %v2997_v27 }
 0x23a   : > { %v2999_v41 = vpop.permute.xlu1 %1187  ;;  %v713_v56 = vpop.permute.xlu0 %712 }
 0x23b   : > { %3785 = vst [vmem:[#allocation47_spill] sm:$0xff] %v2999_v41  ;;  %v794_v12 = vmax.f32 %v2751_v15, %v713_v56 }
 0x23d   : > { %v828_v9 = vmul.f32 16.77872, %v794_v12 }
 0x23e   : > { %v3002_v48 = vpop.permute.xlu1 %1267  ;;  %v745_v43 = vpop.permute.xlu0 %744 }
 0x23f   : > { %3786 = vst [vmem:[#allocation48_spill] sm:$0xff] %v3002_v48  ;;  %v2236_v11 = vadd.f32 -16.77872, %v828_v9  ;;  %v810_v29 = vmax.f32 %v2761_v25, %v745_v43 }
 0x241   : > { %v844_v58 = vmul.f32 16.77872, %v810_v29  ;;  %953 = vperm.xlu1 %2438, %v2236_v11  }
 0x242   : > { %v715_v47 = vpop.permute.xlu1 %714  ;;  %v709_v46 = vpop.permute.xlu0 %708 }
 0x243   : > { %v2252_v16 = vadd.f32 -16.77872, %v844_v58  ;;  %v795_v14 = vmax.f32 %v2771_v37, %v715_v47  ;;  %v792_v4 = vmax.f32 %v2769_v36, %v709_v46 }
 0x245   : > { %v829_v41 = vmul.f32 16.77872, %v795_v14  ;;  %v826_v27 = vmul.f32 16.77872, %v792_v4  ;;  %1033 = vperm.xlu1 %2438, %v2252_v16  }
 0x246   : > { %v747_v56 = vpop.permute.xlu1 %746  ;;  %v741_v12 = vpop.permute.xlu0 %740 }
 0x247   : > { %v2237_v15 = vadd.f32 -16.77872, %v829_v41  ;;  %v2234_v48 = vadd.f32 -16.77872, %v826_v27  ;;  %v811_v9 = vmax.f32 %v2781_v42, %v747_v56  ;;  %v808_v43 = vmax.f32 %v2773_v38, %v741_v12 }
 0x249   : > { %v845_v29 = vmul.f32 16.77872, %v811_v9  ;;  %v842_v11 = vmul.f32 16.77872, %v808_v43  ;;  %958 = vperm.xlu0 %2439, %v2237_v15   ;;  %943 = vperm.xlu1 %2438, %v2234_v48   ;;  %v812_v43 = vlaneseq }
 0x24a   : > { %v711_v58 = vpop.permute.xlu1 %710  ;;  %v3011_v41 = vpop.permute.xlu0 %1212 }
 0x24b   : > { %v2253_v25 = vadd.f32 -16.77872, %v845_v29  ;;  %v2250_v47 = vadd.f32 -16.77872, %v842_v11  ;;  %v793_v46 = vmax.f32 %v2791_v60, %v711_v58  ;;  %v3787_v29 = vmov 50  }
 0x24c   : > { %v3022_v11 = vand.u32 127, %v812_v43 }
 0x24d   : > { %v827_v14 = vmul.f32 16.77872, %v793_v46  ;;  %1038 = vperm.xlu0 %2439, %v2253_v25   ;;  %1023 = vperm.xlu1 %2438, %v2250_v47  }
 0x24e   : > { %v743_v4 = vpop.permute.xlu1 %742  ;;  %v3015_v48 = vpop.permute.xlu0 %1292  ;;  %vm1137_vm1 = vcmp.ge.s32.totalorder %v3022_v11, 16  ;;  %vm1138_vm2 = vcmp.lt.s32.totalorder %v3022_v11, 32  ;;  %vm1396_vm3 = vcmp.ge.s32.totalorder %v3022_v11, 32  ;;  %vm1397_vm4 = vcmp.lt.s32.totalorder %v3022_v11, 48 }
 0x24f   : > { %v2235_v16 = vadd.f32 -16.77872, %v827_v14  ;;  %v809_v27 = vmax.f32 %v2797_v0, %v743_v4  ;;  %vm879_vm5 = vcmp.lt.s32.totalorder %v3022_v11, 16  ;;  %vm3035_vm6 = vmand %vm1137_vm1, %vm1138_vm2 }
 0x250   : > { %vm3039_vm7 = vmand %vm1396_vm3, %vm1397_vm4 }
 0x251   : > { %v843_v56 = vmul.f32 16.77872, %v809_v27  ;;  %948 = vperm.xlu0 %2439, %v2235_v16  }
 0x252   : > { %v3013_v12 = vpop.permute.xlu1 %1217  ;;  %v3024_v58 = vpop.permute.xlu0 %1202 }
 0x253   : > { %v2251_v15 = vadd.f32 -16.77872, %v843_v56 }
 0x255   : > { %1028 = vperm.xlu0 %2439, %v2251_v15  }
 0x256   : > { %v3017_v9 = vpop.permute.xlu1 %1297  ;;  %v3033_v46 = vpop.permute.xlu0 %1282 }
 0x259   : > { %2440 = vset.pattern.permute.xlu0 %v3787_v29 }
 0x25a   : > { %v3020_v25 = vpop.permute.xlu1 %1207 }
 0x25b   : > { %3788 = vst [vmem:[#allocation49_spill] sm:$0xff] %v3020_v25 }
 0x25e   : > { %v3026_v47 = vpop.permute.xlu1 %1287 }
 0x25f   : > { %3789 = vst [vmem:[#allocation50_spill] sm:$0xff] %v3026_v47 }
 0x263   : > { %v894_v16 = vpop.permute.xlu1 %893 }
 0x264   : > { %v1043_v27 = vsel %vm879_vm5, %v894_v16, 0.0 }
 0x265   : > { %v1302_v56 = vsel %vm3035_vm6, %v2933_v61, %v1043_v27 }
 0x266   : > { %v1561_v15 = vsel %vm3039_vm7, %v2812_v49, %v1302_v56  ;;  %v884_v43 = vpop.permute.xlu0 %883 }
 0x267   : > { %v1593_v29 = vadd.f32 %v2643_v20, %v1561_v15  ;;  %v1657_v0 = vsub.f32 %v1561_v15, %v2643_v20  ;;  %v974_v60 = vpop.permute.xlu1 %973  ;;  %v1041_v16 = vsel %vm879_vm5, %v884_v43, 0.0 }
 0x268   : > { %v1059_v47 = vsel %vm879_vm5, %v974_v60, 0.0  ;;  %v1300_v43 = vsel %vm3035_vm6, %v2945_v18, %v1041_v16 }
 0x269   : > { %v1625_v38 = vmax.f32 %v1593_v29, 0.0  ;;  %v1689_v25 = vmax.f32 %v1657_v0, 0.0  ;;  %v1318_v61 = vsel %vm3035_vm6, %v2940_v19, %v1059_v47 }
 0x26a   : > { %v1577_v49 = vsel %vm3039_vm7, %v2817_v53, %v1318_v61  ;;  %v899_v27 = vpop.permute.xlu0 %898 }
 0x26b   : > { %v1609_v20 = vadd.f32 %v2645_v21, %v1577_v49  ;;  %v1673_v56 = vsub.f32 %v1577_v49, %v2645_v21  ;;  %v1044_v60 = vsel %vm879_vm5, %v899_v27, 0.0  ;;  %v964_v0 = vpop.permute.xlu1 %963  ;;  %v3067_v15 = vsub.f32 %v1625_v38, %v1689_v25 }
 0x26c   : > { %v1303_v19 = vsel %vm3035_vm6, %v2948_v52, %v1044_v60  ;;  %v1057_v18 = vsel %vm879_vm5, %v964_v0, 0.0  ;;  %v1559_v52 = vsel %vm3039_vm7, %v2819_v57, %v1300_v43 }
 0x26d   : > { %v1641_v53 = vmax.f32 %v1609_v20, 0.0  ;;  %v1705_v47 = vmax.f32 %v1673_v56, 0.0  ;;  %v1562_v21 = vsel %vm3039_vm7, %v2830_v17, %v1303_v19  ;;  %1787 = vrot.lane.b32.xlu1 %v3067_v15, %s2526_s5  ;;  %v1316_v56 = vsel %vm3035_vm6, %v2943_v28, %v1057_v18 }
 0x26e   : > { %v1594_v38 = vadd.f32 %v2655_v24, %v1562_v21  ;;  %v1658_v25 = vsub.f32 %v1562_v21, %v2655_v24  ;;  %v979_v29 = vpop.permute.xlu0 %978  ;;  %v1591_v19 = vadd.f32 %v1559_v52, %v2651_v22 }
 0x26f   : > { %v1060_v16 = vsel %vm879_vm5, %v979_v29, 0.0  ;;  %v889_v17 = vpop.permute.xlu1 %888  ;;  %v3089_v61 = vsub.f32 %v1641_v53, %v1705_v47  ;;  %v1655_v53 = vsub.f32 %v1559_v52, %v2651_v22 }
 0x270   : > { %v1626_v49 = vmax.f32 %v1594_v38, 0.0  ;;  %v1690_v27 = vmax.f32 %v1658_v25, 0.0  ;;  %v1319_v24 = vsel %vm3035_vm6, %v2951_v6, %v1060_v16  ;;  %v1042_v20 = vsel %vm879_vm5, %v889_v17, 0.0 }
 0x271   : > { %v1578_v57 = vsel %vm3039_vm7, %v2834_v31, %v1319_v24  ;;  %1819 = vrot.lane.b32.xlu1 %v3089_v61, %s2526_s5  ;;  %v1301_v28 = vsel %vm3035_vm6, %v2958_v40, %v1042_v20  ;;  %v1575_v31 = vsel %vm3039_vm7, %v2825_v8, %v1316_v56  ;;  %v1623_v8 = vmax.f32 %v1591_v19, 0.0 }
 0x272   : > { %v1610_v60 = vadd.f32 %v2662_v26, %v1578_v57  ;;  %v1674_v0 = vsub.f32 %v1578_v57, %v2662_v26  ;;  %v969_v43 = vpop.permute.xlu0 %968  ;;  %v3106_v6 = vsub.f32 %v1626_v49, %v1690_v27  ;;  %v1560_v22 = vsel %vm3039_vm7, %v2828_v13, %v1301_v28 }
 0x273   : > { %v1058_v26 = vsel %vm879_vm5, %v969_v43, 0.0  ;;  %v1687_v25 = vmax.f32 %v1655_v53, 0.0  ;;  %v1607_v18 = vadd.f32 %v1575_v31, %v2653_v23  ;;  %v1671_v29 = vsub.f32 %v1575_v31, %v2653_v23 }
 0x274   : > { %v1642_v47 = vmax.f32 %v1610_v60, 0.0  ;;  %v1706_v21 = vmax.f32 %v1674_v0, 0.0  ;;  %1789 = vrot.lane.b32.xlu0 %v3106_v6, %s2526_s5  ;;  %v1317_v52 = vsel %vm3035_vm6, %v2954_v44, %v1058_v26  ;;  %v1592_v16 = vadd.f32 %v1560_v22, %v2670_v30 }
 0x275   : > { %1915 = vrot.lane.b32.xlu1 %v3067_v15, %s2527_s6  ;;  %v1656_v17 = vsub.f32 %v1560_v22, %v2670_v30  ;;  %v1639_v49 = vmax.f32 %v1607_v18, 0.0  ;;  %v1703_v27 = vmax.f32 %v1671_v29, 0.0  ;;  %v1576_v23 = vsel %vm3039_vm7, %v2845_v63, %v1317_v52 }
 0x276   : > { %v914_v40 = vpop.permute.xlu1 %913  ;;  %v3125_v38 = vsub.f32 %v1642_v47, %v1706_v21  ;;  %v3143_v24 = vsub.f32 %v1623_v8, %v1687_v25  ;;  %v1624_v56 = vmax.f32 %v1592_v16, 0.0  ;;  %v1608_v57 = vadd.f32 %v1576_v23, %v2675_v34  ;;  %v3794_v25 = vld [vmem:[#allocation21_spill] sm:$0xff] }
 0x277   : > { %v1047_v13 = vsel %vm879_vm5, %v914_v40, 0.0  ;;  %v1688_v30 = vmax.f32 %v1656_v17, 0.0  ;;  %v1672_v60 = vsub.f32 %v1576_v23, %v2675_v34  ;;  %v3795_v23 = vld [vmem:[#allocation23_spill] sm:$0xff] }
 0x278   : > { %1821 = vrot.lane.b32.xlu0 %v3125_v38, %s2526_s5  ;;  %v1306_v20 = vsel %vm3035_vm6, %v2961_v32, %v1047_v13  ;;  %v3159_v32 = vsub.f32 %v1639_v49, %v1703_v27  ;;  %v1640_v34 = vmax.f32 %v1608_v57, 0.0 }
 0x279   : > { %1947 = vrot.lane.b32.xlu1 %v3089_v61, %s2527_s6  ;;  %v1565_v0 = vsel %vm3039_vm7, %v2839_v51, %v1306_v20  ;;  %v1704_v19 = vmax.f32 %v1672_v60, 0.0  ;;  %v3169_v28 = vsub.f32 %v1624_v56, %v1688_v30  ;;  %v3796_v56 = vld [vmem:[#allocation42_spill] sm:$0xff] }
 0x27a   : > { %v994_v44 = vpop.permute.xlu1 %993  ;;  %v1597_v53 = vadd.f32 %v2677_v35, %v1565_v0  ;;  %v1661_v51 = vsub.f32 %v1565_v0, %v2677_v35 }
 0x27b   : > { %v1063_v63 = vsel %vm879_vm5, %v994_v44, 0.0  ;;  %v3184_v22 = vsub.f32 %v1640_v34, %v1704_v19  ;;  %v3798_v34 = vld [vmem:[#allocation20_spill] sm:$0xff] }
 0x27c   : > { %1917 = vrot.lane.b32.xlu0 %v3106_v6, %s2527_s6  ;;  %v1322_v43 = vsel %vm3035_vm6, %v2964_v62, %v1063_v63  ;;  %v1629_v26 = vmax.f32 %v1597_v53, 0.0  ;;  %v1693_v40 = vmax.f32 %v1661_v51, 0.0  ;;  %v3797_v63 = vld [vmem:[#allocation7_spill] sm:$0xff] }
 0x27d   : > { %1783 = vrot.lane.b32.xlu1 %v3143_v24, %s2526_s5  ;;  %v1581_v31 = vsel %vm3039_vm7, %v2847_v1, %v1322_v43 }
 0x27e   : > { %v904_v47 = vpop.permute.xlu1 %903  ;;  %v1613_v1 = vadd.f32 %v2685_v39, %v1581_v31  ;;  %v1677_v8 = vsub.f32 %v1581_v31, %v2685_v39  ;;  %v3207_v20 = vsub.f32 %v1629_v26, %v1693_v40  ;;  %v3799_v31 = vld [vmem:[#allocation43_spill] sm:$0xff] }
 0x27f   : > { %v1045_v52 = vsel %vm879_vm5, %v904_v47, 0.0 }
 0x280   : > { %1949 = vrot.lane.b32.xlu0 %v3125_v38, %s2527_s6  ;;  %v1645_v49 = vmax.f32 %v1613_v1, 0.0  ;;  %v1709_v27 = vmax.f32 %v1677_v8, 0.0  ;;  %v1304_v30 = vsel %vm3035_vm6, %v3796_v56, %v1045_v52  ;;  %v3805_v56 = vld [vmem:[#allocation45_spill] sm:$0xff] }
 0x281   : > { %1815 = vrot.lane.b32.xlu1 %v3159_v32, %s2526_s5  ;;  %v1563_v19 = vsel %vm3039_vm7, %v3798_v34, %v1304_v30 }
 0x282   : > { %v984_v16 = vpop.permute.xlu1 %983  ;;  %v3223_v53 = vsub.f32 %v1645_v49, %v1709_v27  ;;  %v3804_v27 = vld [vmem:[#allocation6_spill] sm:$0xff] }
 0x283   : > { %v1061_v57 = vsel %vm879_vm5, %v984_v16, 0.0 }
 0x284   : > { %1785 = vrot.lane.b32.xlu0 %v3169_v28, %s2526_s5  ;;  %v919_v62 = vpop.permute.xlu0 %918  ;;  %v1320_v47 = vsel %vm3035_vm6, %v3799_v31, %v1061_v57 }
 0x285   : > { %v1048_v21 = vsel %vm879_vm5, %v919_v62, 0.0  ;;  %1911 = vrot.lane.b32.xlu1 %v3143_v24, %s2527_s6 }
 0x286   : > { %v1307_v35 = vsel %vm3035_vm6, %v2967_v10, %v1048_v21  ;;  %v3800_v21 = vld [vmem:[#allocation5_spill] sm:$0xff] }
 0x287   : > { %v1566_v18 = vsel %vm3039_vm7, %v3794_v25, %v1307_v35  ;;  %v1595_v26 = vadd.f32 %v1563_v19, %v3800_v21  ;;  %v1659_v8 = vsub.f32 %v1563_v19, %v3800_v21  ;;  %v3801_v25 = vld [vmem:[#allocation44_spill] sm:$0xff] }
 0x288   : > { %1817 = vrot.lane.b32.xlu0 %v3184_v22, %s2526_s5  ;;  %v999_v29 = vpop.permute.xlu0 %998  ;;  %v1598_v39 = vadd.f32 %v2692_v45, %v1566_v18  ;;  %v1662_v13 = vsub.f32 %v1566_v18, %v2692_v45 }
 0x289   : > { %v1064_v10 = vsel %vm879_vm5, %v999_v29, 0.0  ;;  %1943 = vrot.lane.b32.xlu1 %v3159_v32, %s2527_s6  ;;  %v3802_v29 = vld [vmem:[#allocation22_spill] sm:$0xff]  ;;  %v1627_v16 = vmax.f32 %v1595_v26, 0.0  ;;  %v1691_v49 = vmax.f32 %v1659_v8, 0.0 }
 0x28a   : > { %v1323_v17 = vsel %vm3035_vm6, %v2971_v33, %v1064_v10  ;;  %v1630_v33 = vmax.f32 %v1598_v39, 0.0  ;;  %v1694_v60 = vmax.f32 %v1662_v13, 0.0  ;;  %v1579_v52 = vsel %vm3039_vm7, %v3802_v29, %v1320_v47  ;;  %v3803_v39 = vld [vmem:[#allocation24_spill] sm:$0xff]  ;;  %v3808_v47 = vld [vmem:[#allocation10_spill] sm:$0xff] }
 0x28b   : > { %v1582_v44 = vsel %vm3039_vm7, %v3795_v23, %v1323_v17  ;;  %v1611_v23 = vadd.f32 %v1579_v52, %v3804_v27  ;;  %v3269_v34 = vsub.f32 %v1627_v16, %v1691_v49  ;;  %v3810_v16 = vld [vmem:[#allocation9_spill] sm:$0xff] }
 0x28c   : > { %1913 = vrot.lane.b32.xlu0 %v3169_v28, %s2527_s6  ;;  %v909_v45 = vpop.permute.xlu0 %908  ;;  %v1614_v0 = vadd.f32 %v3797_v63, %v1582_v44  ;;  %v1678_v43 = vsub.f32 %v1582_v44, %v3797_v63  ;;  %v3235_v1 = vsub.f32 %v1630_v33, %v1694_v60  ;;  %v1675_v44 = vsub.f32 %v1579_v52, %v3804_v27  ;;  %v3807_v60 = vld [vmem:[#allocation26_spill] sm:$0xff]  ;;  %v3811_v27 = vld [vmem:[#allocation27_spill] sm:$0xff] }
 0x28d   : > { %1795 = vrot.lane.b32.xlu1 %v3207_v20, %s2526_s5  ;;  %v1046_v51 = vsel %vm879_vm5, %v909_v45, 0.0  ;;  %v3806_v45 = vld [vmem:[#allocation8_spill] sm:$0xff] }
 0x28e   : > { %v1646_v35 = vmax.f32 %v1614_v0, 0.0  ;;  %v1710_v40 = vmax.f32 %v1678_v43, 0.0  ;;  %v1305_v18 = vsel %vm3035_vm6, %v3801_v25, %v1046_v51  ;;  %v1643_v0 = vmax.f32 %v1611_v23, 0.0 }
 0x28f   : > { %v1564_v13 = vsel %vm3039_vm7, %v3803_v39, %v1305_v18  ;;  %v1707_v43 = vmax.f32 %v1675_v44, 0.0 }
 0x290   : > { %1945 = vrot.lane.b32.xlu0 %v3184_v22, %s2527_s6  ;;  %v989_v62 = vpop.permute.xlu0 %988  ;;  %v3253_v17 = vsub.f32 %v1646_v35, %v1710_v40  ;;  %v1596_v57 = vadd.f32 %v1564_v13, %v3806_v45  ;;  %v1660_v33 = vsub.f32 %v1564_v13, %v3806_v45  ;;  %v3809_v40 = vld [vmem:[#allocation25_spill] sm:$0xff] }
 0x291   : > { %1827 = vrot.lane.b32.xlu1 %v3223_v53, %s2526_s5  ;;  %v1062_v10 = vsel %vm879_vm5, %v989_v62, 0.0  ;;  %v3285_v25 = vsub.f32 %v1643_v0, %v1707_v43 }
 0x292   : > { %v1321_v30 = vsel %vm3035_vm6, %v3805_v56, %v1062_v10  ;;  %v1628_v51 = vmax.f32 %v1596_v57, 0.0  ;;  %v1692_v31 = vmax.f32 %v1660_v33, 0.0 }
 0x293   : > { %v1580_v63 = vsel %vm3039_vm7, %v3807_v60, %v1321_v30  ;;  %v3812_v60 = vld [vmem:[#allocation11_spill] sm:$0xff] }
 0x294   : > { %1797 = vrot.lane.b32.xlu0 %v3235_v1, %s2526_s5  ;;  %v1612_v62 = vadd.f32 %v1580_v63, %v3808_v47  ;;  %v1676_v26 = vsub.f32 %v1580_v63, %v3808_v47  ;;  %v3293_v10 = vsub.f32 %v1628_v51, %v1692_v31 }
 0x295   : > { %1923 = vrot.lane.b32.xlu1 %v3207_v20, %s2527_s6 }
 0x296   : > { %v1644_v29 = vmax.f32 %v1612_v62, 0.0 }
 0x298   : > { %1829 = vrot.lane.b32.xlu0 %v3253_v17, %s2526_s5 }
 0x299   : > { %1955 = vrot.lane.b32.xlu1 %v3223_v53, %s2527_s6 }
 0x29c   : > { %v934_v19 = vpop.permute.xlu1 %933  ;;  %1925 = vrot.lane.b32.xlu0 %v3235_v1, %s2527_s6 }
 0x29d   : > { %v1051_v21 = vsel %vm879_vm5, %v934_v19, 0.0  ;;  %1791 = vrot.lane.b32.xlu1 %v3269_v34, %s2526_s5  ;;  %v3813_v19 = vld [vmem:[#allocation29_spill] sm:$0xff] }
 0x29e   : > { %v1310_v35 = vsel %vm3035_vm6, %v2985_v59, %v1051_v21  ;;  %v1708_v59 = vmax.f32 %v1676_v26, 0.0 }
 0x29f   : > { %v1569_v8 = vsel %vm3039_vm7, %v3809_v40, %v1310_v35 }
 0x2a0   : > { %v1014_v18 = vpop.permute.xlu1 %1013  ;;  %1957 = vrot.lane.b32.xlu0 %v3253_v17, %s2527_s6  ;;  %v1601_v39 = vadd.f32 %v3810_v16, %v1569_v8  ;;  %v1665_v13 = vsub.f32 %v1569_v8, %v3810_v16  ;;  %v3312_v33 = vsub.f32 %v1644_v29, %v1708_v59  ;;  %v3814_v29 = vld [vmem:[#allocation31_spill] sm:$0xff]  ;;  %v3815_v59 = vld [vmem:[#allocation28_spill] sm:$0xff] }
 0x2a1   : > { %v1067_v52 = vsel %vm879_vm5, %v1014_v18, 0.0  ;;  %1823 = vrot.lane.b32.xlu1 %v3285_v25, %s2526_s5 }
 0x2a2   : > { %v1326_v49 = vsel %vm3035_vm6, %v2988_v5, %v1067_v52  ;;  %v1633_v45 = vmax.f32 %v1601_v39, 0.0  ;;  %v1697_v57 = vmax.f32 %v1665_v13, 0.0 }
 0x2a3   : > { %v1585_v23 = vsel %vm3039_vm7, %v3811_v27, %v1326_v49 }
 0x2a4   : > { %v924_v44 = vpop.permute.xlu1 %923  ;;  %1793 = vrot.lane.b32.xlu0 %v3293_v10, %s2526_s5  ;;  %v939_v56 = vpop.permute.xlu0 %938  ;;  %v1617_v63 = vadd.f32 %v3812_v60, %v1585_v23  ;;  %v1681_v0 = vsub.f32 %v1585_v23, %v3812_v60  ;;  %v3335_v18 = vsub.f32 %v1633_v45, %v1697_v57 }
 0x2a5   : > { %v1052_v30 = vsel %vm879_vm5, %v939_v56, 0.0  ;;  %1919 = vrot.lane.b32.xlu1 %v3269_v34, %s2527_s6  ;;  %v1049_v43 = vsel %vm879_vm5, %v924_v44, 0.0  ;;  %v3816_v44 = vld [vmem:[#allocation46_spill] sm:$0xff] }
 0x2a6   : > { %v1311_v5 = vsel %vm3035_vm6, %v2991_v55, %v1052_v30  ;;  %v1308_v47 = vsel %vm3035_vm6, %v2993_v54, %v1049_v43  ;;  %v1649_v35 = vmax.f32 %v1617_v63, 0.0  ;;  %v1713_v40 = vmax.f32 %v1681_v0, 0.0  ;;  %v3817_v63 = vld [vmem:[#allocation30_spill] sm:$0xff]  ;;  %v3818_v43 = vld [vmem:[#allocation47_spill] sm:$0xff] }
 0x2a7   : > { %v1570_v51 = vsel %vm3039_vm7, %v3813_v19, %v1311_v5 }
 0x2a8   : > { %1825 = vrot.lane.b32.xlu0 %v3312_v33, %s2526_s5  ;;  %v1019_v31 = vpop.permute.xlu0 %1018  ;;  %v1602_v62 = vadd.f32 %v2731_v3, %v1570_v51  ;;  %v1666_v21 = vsub.f32 %v1570_v51, %v2731_v3  ;;  %v1004_v26 = vpop.permute.xlu1 %1003  ;;  %v1567_v3 = vsel %vm3039_vm7, %v3815_v59, %v1308_v47  ;;  %v3351_v27 = vsub.f32 %v1649_v35, %v1713_v40  ;;  %v3819_v47 = vld [vmem:[#allocation12_spill] sm:$0xff]  ;;  %v3823_v59 = vld [vmem:[#allocation34_spill] sm:$0xff] }
 0x2a9   : > { %v1068_v55 = vsel %vm879_vm5, %v1019_v31, 0.0  ;;  %1951 = vrot.lane.b32.xlu1 %v3285_v25, %s2527_s6  ;;  %v1065_v16 = vsel %vm879_vm5, %v1004_v26, 0.0  ;;  %v1599_v23 = vadd.f32 %v1567_v3, %v2729_v2  ;;  %v3820_v26 = vld [vmem:[#allocation32_spill] sm:$0xff] }
 0x2aa   : > { %v1327_v8 = vsel %vm3035_vm6, %v2995_v50, %v1068_v55  ;;  %v1634_v50 = vmax.f32 %v1602_v62, 0.0  ;;  %v1698_v39 = vmax.f32 %v1666_v21, 0.0  ;;  %v1324_v56 = vsel %vm3035_vm6, %v3816_v44, %v1065_v16  ;;  %v3821_v40 = vld [vmem:[#allocation48_spill] sm:$0xff] }
 0x2ab   : > { %v1586_v52 = vsel %vm3039_vm7, %v3814_v29, %v1327_v8  ;;  %v1583_v0 = vsel %vm3039_vm7, %v3817_v63, %v1324_v56  ;;  %v3822_v29 = vld [vmem:[#allocation13_spill] sm:$0xff] }
 0x2ac   : > { %1921 = vrot.lane.b32.xlu0 %v3293_v10, %s2527_s6  ;;  %v929_v54 = vpop.permute.xlu0 %928  ;;  %v1618_v13 = vadd.f32 %v2741_v7, %v1586_v52  ;;  %v1682_v49 = vsub.f32 %v1586_v52, %v2741_v7  ;;  %v1663_v7 = vsub.f32 %v1567_v3, %v2729_v2  ;;  %v3364_v60 = vsub.f32 %v1634_v50, %v1698_v39 }
 0x2ad   : > { %1803 = vrot.lane.b32.xlu1 %v3335_v18, %s2526_s5  ;;  %v1050_v30 = vsel %vm879_vm5, %v929_v54, 0.0  ;;  %v1631_v2 = vmax.f32 %v1599_v23, 0.0  ;;  %v1615_v62 = vadd.f32 %v1583_v0, %v3819_v47  ;;  %v1679_v21 = vsub.f32 %v1583_v0, %v3819_v47 }
 0x2ae   : > { %v1650_v57 = vmax.f32 %v1618_v13, 0.0  ;;  %v1714_v5 = vmax.f32 %v1682_v49, 0.0  ;;  %v1309_v19 = vsel %vm3035_vm6, %v3818_v43, %v1050_v30  ;;  %v1695_v31 = vmax.f32 %v1663_v7, 0.0  ;;  %v3824_v49 = vld [vmem:[#allocation15_spill] sm:$0xff] }
 0x2af   : > { %v1568_v35 = vsel %vm3039_vm7, %v3820_v26, %v1309_v19  ;;  %v1647_v16 = vmax.f32 %v1615_v62, 0.0  ;;  %v1711_v50 = vmax.f32 %v1679_v21, 0.0  ;;  %v3827_v21 = vld [vmem:[#allocation35_spill] sm:$0xff] }
 0x2b0   : > { %1953 = vrot.lane.b32.xlu0 %v3312_v33, %s2527_s6  ;;  %v1009_v45 = vpop.permute.xlu0 %1008  ;;  %v3378_v55 = vsub.f32 %v1650_v57, %v1714_v5  ;;  %v1600_v52 = vadd.f32 %v1568_v35, %v3822_v29  ;;  %v1664_v54 = vsub.f32 %v1568_v35, %v3822_v29  ;;  %v3397_v39 = vsub.f32 %v1631_v2, %v1695_v31  ;;  %v3825_v57 = vld [vmem:[#allocation33_spill] sm:$0xff]  ;;  %v3826_v2 = vld [vmem:[#allocation14_spill] sm:$0xff] }
 0x2b1   : > { %1835 = vrot.lane.b32.xlu1 %v3351_v27, %s2526_s5  ;;  %v1066_v51 = vsel %vm879_vm5, %v1009_v45, 0.0  ;;  %v3413_v63 = vsub.f32 %v1647_v16, %v1711_v50 }
 0x2b2   : > { %v1325_v8 = vsel %vm3035_vm6, %v3821_v40, %v1066_v51  ;;  %v1632_v30 = vmax.f32 %v1600_v52, 0.0  ;;  %v1696_v45 = vmax.f32 %v1664_v54, 0.0 }
 0x2b3   : > { %v1584_v3 = vsel %vm3039_vm7, %v3823_v59, %v1325_v8 }
 0x2b4   : > { %1805 = vrot.lane.b32.xlu0 %v3364_v60, %s2526_s5  ;;  %v1616_v23 = vadd.f32 %v1584_v3, %v3824_v49  ;;  %v1680_v44 = vsub.f32 %v1584_v3, %v3824_v49  ;;  %v3426_v62 = vsub.f32 %v1632_v30, %v1696_v45  ;;  %v3828_v3 = vld [vmem:[#allocation16_spill] sm:$0xff]  ;;  %v3830_v45 = vld [vmem:[#allocation38_spill] sm:$0xff] }
 0x2b5   : > { %1931 = vrot.lane.b32.xlu1 %v3335_v18, %s2527_s6  ;;  %v3829_v49 = vld [vmem:[#allocation36_spill] sm:$0xff] }
 0x2b6   : > { %v1648_v43 = vmax.f32 %v1616_v23, 0.0  ;;  %v1712_v19 = vmax.f32 %v1680_v44, 0.0 }
 0x2b8   : > { %1837 = vrot.lane.b32.xlu0 %v3378_v55, %s2526_s5  ;;  %v3442_v59 = vsub.f32 %v1648_v43, %v1712_v19 }
 0x2b9   : > { %1963 = vrot.lane.b32.xlu1 %v3351_v27, %s2527_s6 }
 0x2bc   : > { %v954_v13 = vpop.permute.xlu1 %953  ;;  %1933 = vrot.lane.b32.xlu0 %v3364_v60, %s2527_s6 }
 0x2bd   : > { %v1055_v56 = vsel %vm879_vm5, %v954_v13, 0.0  ;;  %1799 = vrot.lane.b32.xlu1 %v3397_v39, %s2526_s5 }
 0x2be   : > { %v1314_v7 = vsel %vm3035_vm6, %v3011_v41, %v1055_v56 }
 0x2bf   : > { %v1573_v5 = vsel %vm3039_vm7, %v3825_v57, %v1314_v7 }
 0x2c0   : > { %v1034_v0 = vpop.permute.xlu1 %1033  ;;  %1965 = vrot.lane.b32.xlu0 %v3378_v55, %s2527_s6  ;;  %v1605_v41 = vadd.f32 %v3826_v2, %v1573_v5  ;;  %v1669_v31 = vsub.f32 %v1573_v5, %v3826_v2 }
 0x2c1   : > { %v1071_v51 = vsel %vm879_vm5, %v1034_v0, 0.0  ;;  %1831 = vrot.lane.b32.xlu1 %v3413_v63, %s2526_s5 }
 0x2c2   : > { %v1330_v47 = vsel %vm3035_vm6, %v3015_v48, %v1071_v51  ;;  %v1637_v48 = vmax.f32 %v1605_v41, 0.0  ;;  %v1701_v52 = vmax.f32 %v1669_v31, 0.0  ;;  %v3831_v51 = vld [vmem:[#allocation37_spill] sm:$0xff] }
 0x2c3   : > { %v1589_v26 = vsel %vm3039_vm7, %v3827_v21, %v1330_v47 }
 0x2c4   : > { %v944_v35 = vpop.permute.xlu1 %943  ;;  %1801 = vrot.lane.b32.xlu0 %v3426_v62, %s2526_s5  ;;  %v959_v40 = vpop.permute.xlu0 %958  ;;  %v1621_v16 = vadd.f32 %v3828_v3, %v1589_v26  ;;  %v1685_v50 = vsub.f32 %v1589_v26, %v3828_v3  ;;  %v3468_v19 = vsub.f32 %v1637_v48, %v1701_v52 }
 0x2c5   : > { %v1053_v8 = vsel %vm879_vm5, %v944_v35, 0.0  ;;  %v1056_v29 = vsel %vm879_vm5, %v959_v40, 0.0  ;;  %1927 = vrot.lane.b32.xlu1 %v3397_v39, %s2527_s6 }
 0x2c6   : > { %v1315_v54 = vsel %vm3035_vm6, %v3013_v12, %v1056_v29  ;;  %v1312_v13 = vsel %vm3035_vm6, %v3024_v58, %v1053_v8  ;;  %v1653_v5 = vmax.f32 %v1621_v16, 0.0  ;;  %v1717_v0 = vmax.f32 %v1685_v50, 0.0  ;;  %v3832_v29 = vld [vmem:[#allocation40_spill] sm:$0xff] }
 0x2c7   : > { %v1574_v23 = vsel %vm3039_vm7, %v3829_v49, %v1315_v54  ;;  %v1571_v58 = vsel %vm3039_vm7, %v3830_v45, %v1312_v13  ;;  %v3834_v49 = vld [vmem:[#allocation17_spill] sm:$0xff]  ;;  %v3837_v45 = vld [vmem:[#allocation18_spill] sm:$0xff] }
 0x2c8   : > { %v1024_v44 = vpop.permute.xlu1 %1023  ;;  %1833 = vrot.lane.b32.xlu0 %v3442_v59, %s2526_s5  ;;  %v1039_v56 = vpop.permute.xlu0 %1038  ;;  %v1606_v12 = vadd.f32 %v2771_v37, %v1574_v23  ;;  %v1670_v7 = vsub.f32 %v1574_v23, %v2771_v37  ;;  %v1603_v37 = vadd.f32 %v1571_v58, %v2769_v36  ;;  %v1667_v40 = vsub.f32 %v1571_v58, %v2769_v36 }
 0x2c9   : > { %v1072_v30 = vsel %vm879_vm5, %v1039_v56, 0.0  ;;  %1959 = vrot.lane.b32.xlu1 %v3413_v63, %s2527_s6  ;;  %v1069_v57 = vsel %vm879_vm5, %v1024_v44, 0.0  ;;  %v3486_v8 = vsub.f32 %v1653_v5, %v1717_v0  ;;  %v3835_v56 = vld [vmem:[#allocation39_spill] sm:$0xff] }
 0x2ca   : > { %v1331_v43 = vsel %vm3035_vm6, %v3017_v9, %v1072_v30  ;;  %v1638_v31 = vmax.f32 %v1606_v12, 0.0  ;;  %v1328_v47 = vsel %vm3035_vm6, %v3033_v46, %v1069_v57  ;;  %v1702_v9 = vmax.f32 %v1670_v7, 0.0  ;;  %v3833_v46 = vld [vmem:[#allocation49_spill] sm:$0xff]  ;;  %v3836_v30 = vld [vmem:[#allocation50_spill] sm:$0xff] }
 0x2cb   : > { %v1590_v2 = vsel %vm3039_vm7, %v3831_v51, %v1331_v43  ;;  %v1587_v48 = vsel %vm3039_vm7, %v3832_v29, %v1328_v47  ;;  %v1635_v36 = vmax.f32 %v1603_v37, 0.0  ;;  %v1699_v13 = vmax.f32 %v1667_v40, 0.0  ;;  %v3838_v43 = vld [vmem:[#allocation41_spill] sm:$0xff]  ;;  %v3839_v37 = vld [vmem:[#allocation19_spill] sm:$0xff] }
 0x2cc   : > { %1929 = vrot.lane.b32.xlu0 %v3426_v62, %s2527_s6  ;;  %v949_v41 = vpop.permute.xlu0 %948  ;;  %v1622_v21 = vadd.f32 %v2781_v42, %v1590_v2  ;;  %v1686_v26 = vsub.f32 %v1590_v2, %v2781_v42  ;;  %v3500_v50 = vsub.f32 %v1638_v31, %v1702_v9  ;;  %v1619_v23 = vadd.f32 %v1587_v48, %v3834_v49 }
 0x2cd   : > { %1811 = vrot.lane.b32.xlu1 %v3468_v19, %s2526_s5  ;;  %v1054_v35 = vsel %vm879_vm5, %v949_v41, 0.0  ;;  %v1683_v44 = vsub.f32 %v1587_v48, %v3834_v49  ;;  %v3521_v14 = vsub.f32 %v1635_v36, %v1699_v13 }
 0x2ce   : > { %v1313_v52 = vsel %vm3035_vm6, %v3833_v46, %v1054_v35  ;;  %v1654_v3 = vmax.f32 %v1622_v21, 0.0  ;;  %v1718_v16 = vmax.f32 %v1686_v26, 0.0  ;;  %v1651_v5 = vmax.f32 %v1619_v23, 0.0 }
 0x2cf   : > { %v1572_v12 = vsel %vm3039_vm7, %v3835_v56, %v1313_v52  ;;  %v1715_v0 = vmax.f32 %v1683_v44, 0.0 }
 0x2d0   : > { %1961 = vrot.lane.b32.xlu0 %v3442_v59, %s2527_s6  ;;  %v1029_v54 = vpop.permute.xlu0 %1028  ;;  %v1604_v58 = vadd.f32 %v1572_v12, %v3837_v45  ;;  %v1668_v7 = vsub.f32 %v1572_v12, %v3837_v45  ;;  %v3516_v57 = vsub.f32 %v1654_v3, %v1718_v16 }
 0x2d1   : > { %v1070_v42 = vsel %vm879_vm5, %v1029_v54, 0.0  ;;  %1843 = vrot.lane.b32.xlu1 %v3486_v8, %s2526_s5  ;;  %v3529_v9 = vsub.f32 %v1651_v5, %v1715_v0 }
 0x2d2   : > { %v1329_v11 = vsel %vm3035_vm6, %v3836_v30, %v1070_v42  ;;  %v1636_v2 = vmax.f32 %v1604_v58, 0.0  ;;  %v1700_v41 = vmax.f32 %v1668_v7, 0.0 }
 0x2d3   : > { %v1588_v51 = vsel %vm3039_vm7, %v3838_v43, %v1329_v11 }
 0x2d4   : > { %1813 = vrot.lane.b32.xlu0 %v3500_v50, %s2526_s5  ;;  %v1620_v31 = vadd.f32 %v1588_v51, %v3839_v37  ;;  %v1684_v47 = vsub.f32 %v1588_v51, %v3839_v37  ;;  %v3535_v26 = vsub.f32 %v1636_v2, %v1700_v41 }
 0x2d5   : > { %1939 = vrot.lane.b32.xlu1 %v3468_v19, %s2527_s6 }
 0x2d6   : > { %v1652_v4 = vmax.f32 %v1620_v31, 0.0  ;;  %v1716_v21 = vmax.f32 %v1684_v47, 0.0 }
 0x2d8   : > { %1845 = vrot.lane.b32.xlu0 %v3516_v57, %s2526_s5  ;;  %v3541_v40 = vsub.f32 %v1652_v4, %v1716_v21 }
 0x2d9   : > { %1807 = vrot.lane.b32.xlu1 %v3521_v14, %s2526_s5 }
 0x2dc   : > { %1941 = vrot.lane.b32.xlu0 %v3500_v50, %s2527_s6 }
 0x2dd   : > { %1839 = vrot.lane.b32.xlu1 %v3529_v9, %s2526_s5 }
 0x2df   : > { %v1788_v35 = vpop.permute.xlu1 %1787 }
 0x2e0   : > { %1809 = vrot.lane.b32.xlu0 %v3535_v26, %s2526_s5  ;;  %v1881_v48 = vadd.f32 %v1788_v35, %v3067_v15 }
 0x2e1   : > { %1935 = vrot.lane.b32.xlu1 %v3521_v14, %s2527_s6 }
 0x2e3   : > { %v1820_v29 = vpop.permute.xlu1 %1819 }
 0x2e4   : > { %1841 = vrot.lane.b32.xlu0 %v3541_v40, %s2526_s5  ;;  %v1897_v42 = vadd.f32 %v1820_v29, %v3089_v61 }
 0x2e5   : > { %1967 = vrot.lane.b32.xlu1 %v3529_v9, %s2527_s6 }
 0x2e6   : > { %v1790_v46 = vpop.permute.xlu0 %1789 }
 0x2e7   : > { %v1916_v52 = vpop.permute.xlu1 %1915  ;;  %v1882_v13 = vadd.f32 %v1790_v46, %v3106_v6 }
 0x2e8   : > { %v2009_v54 = vadd.f32 %v1916_v52, %v1881_v48  ;;  %1937 = vrot.lane.b32.xlu0 %v3535_v26, %s2527_s6 }
 0x2e9   : > { %1971 = vrot.lane.b32.xlu1 %v3486_v8, %s2527_s6 }
 0x2ea   : > { %v2042_v36 = vsel %vm2039_vm8, %v2009_v54, 0.0  ;;  %v1822_v3 = vpop.permute.xlu0 %1821 }
 0x2eb   : > { %2074 = vst [vmem:[%s3557_s14 + $0x10] sm:$0xff] %v2042_v36  ;;  %v1948_v15 = vpop.permute.xlu1 %1947  ;;  %v1898_v56 = vadd.f32 %v1822_v3, %v3125_v38 }
 0x2ec   : > { %v2025_v16 = vadd.f32 %v1948_v15, %v1897_v42  ;;  %1969 = vrot.lane.b32.xlu0 %v3541_v40, %s2527_s6 }
 0x2ee   : > { %v2058_v49 = vsel %vm2039_vm8, %v2025_v16, 0.0  ;;  %v1918_v61 = vpop.permute.xlu0 %1917 }
 0x2ef   : > { %2090 = vst [vmem:[%s3557_s14 + $0x90] sm:$0xff] %v2058_v49  ;;  %v2010_v23 = vadd.f32 %v1918_v61, %v1882_v13  ;;  %v1784_v44 = vpop.permute.xlu1 %1783 }
 0x2f0   : > { %1973 = vrot.lane.b32.xlu0 %v3516_v57, %s2527_s6  ;;  %v1879_v58 = vadd.f32 %v1784_v44, %v3143_v24 }
 0x2f1   : > { %v2043_v12 = vsel %vm2039_vm8, %v2010_v23, 0.0 }
 0x2f2   : > { %2075 = vst [vmem:[%s3557_s14 + $0x18] sm:$0xff] %v2043_v12  ;;  %v1950_v30 = vpop.permute.xlu0 %1949 }
 0x2f3   : > { %v2026_v11 = vadd.f32 %v1950_v30, %v1898_v56  ;;  %v1816_v45 = vpop.permute.xlu1 %1815 }
 0x2f4   : > { %v1895_v43 = vadd.f32 %v1816_v45, %v3159_v32 }
 0x2f5   : > { %v2059_v6 = vsel %vm2039_vm8, %v2026_v11, 0.0 }
 0x2f6   : > { %2091 = vst [vmem:[%s3557_s14 + $0x98] sm:$0xff] %v2059_v6  ;;  %v1786_v7 = vpop.permute.xlu0 %1785 }
 0x2f7   : > { %v1912_v5 = vpop.permute.xlu1 %1911  ;;  %v1880_v37 = vadd.f32 %v1786_v7, %v3169_v28 }
 0x2f8   : > { %v2007_v0 = vadd.f32 %v1912_v5, %v1879_v58 }
 0x2fa   : > { %v2040_v38 = vsel %vm2039_vm8, %v2007_v0, 0.0  ;;  %v1818_v51 = vpop.permute.xlu0 %1817 }
 0x2fb   : > { %2072 = vst [vmem:[%s3557_s14] sm:$0xff] %v2040_v38  ;;  %v1944_v2 = vpop.permute.xlu1 %1943  ;;  %v1896_v21 = vadd.f32 %v1818_v51, %v3184_v22 }
 0x2fc   : > { %v2023_v41 = vadd.f32 %v1944_v2, %v1895_v43 }
 0x2fe   : > { %v2056_v31 = vsel %vm2039_vm8, %v2023_v41, 0.0  ;;  %v1914_v47 = vpop.permute.xlu0 %1913 }
 0x2ff   : > { %2088 = vst [vmem:[%s3557_s14 + $0x80] sm:$0xff] %v2056_v31  ;;  %v2008_v24 = vadd.f32 %v1914_v47, %v1880_v37  ;;  %v1796_v4 = vpop.permute.xlu1 %1795 }
 0x300   : > { %v1885_v28 = vadd.f32 %v1796_v4, %v3207_v20 }
 0x301   : > { %v2041_v32 = vsel %vm2039_vm8, %v2008_v24, 0.0 }
 0x302   : > { %2073 = vst [vmem:[%s3557_s14 + $0x8] sm:$0xff] %v2041_v32  ;;  %v1946_v35 = vpop.permute.xlu0 %1945 }
 0x303   : > { %v2024_v29 = vadd.f32 %v1946_v35, %v1896_v21  ;;  %v1828_v48 = vpop.permute.xlu1 %1827 }
 0x304   : > { %v1901_v36 = vadd.f32 %v1828_v48, %v3223_v53 }
 0x305   : > { %v2057_v46 = vsel %vm2039_vm8, %v2024_v29, 0.0 }
 0x306   : > { %2089 = vst [vmem:[%s3557_s14 + $0x88] sm:$0xff] %v2057_v46  ;;  %v1798_v52 = vpop.permute.xlu0 %1797 }
 0x307   : > { %v1924_v54 = vpop.permute.xlu1 %1923  ;;  %v1886_v13 = vadd.f32 %v1798_v52, %v3235_v1 }
 0x308   : > { %v2013_v42 = vadd.f32 %v1924_v54, %v1885_v28 }
 0x30a   : > { %v2046_v22 = vsel %vm2039_vm8, %v2013_v42, 0.0  ;;  %v1830_v3 = vpop.permute.xlu0 %1829 }
 0x30b   : > { %2078 = vst [vmem:[%s3557_s14 + $0x30] sm:$0xff] %v2046_v22  ;;  %v1956_v15 = vpop.permute.xlu1 %1955  ;;  %v1902_v44 = vadd.f32 %v1830_v3, %v3253_v17 }
 0x30c   : > { %v2029_v16 = vadd.f32 %v1956_v15, %v1901_v36 }
 0x30e   : > { %v2062_v49 = vsel %vm2039_vm8, %v2029_v16, 0.0  ;;  %v1926_v61 = vpop.permute.xlu0 %1925 }
 0x30f   : > { %2094 = vst [vmem:[%s3557_s14 + $0xb0] sm:$0xff] %v2062_v49  ;;  %v2014_v20 = vadd.f32 %v1926_v61, %v1886_v13  ;;  %v1792_v23 = vpop.permute.xlu1 %1791 }
 0x310   : > { %v1883_v1 = vadd.f32 %v1792_v23, %v3269_v34 }
 0x311   : > { %v2047_v53 = vsel %vm2039_vm8, %v2014_v20, 0.0 }
 0x312   : > { %2079 = vst [vmem:[%s3557_s14 + $0x38] sm:$0xff] %v2047_v53  ;;  %v1958_v56 = vpop.permute.xlu0 %1957 }
 0x313   : > { %v2030_v12 = vadd.f32 %v1958_v56, %v1902_v44  ;;  %v1824_v30 = vpop.permute.xlu1 %1823 }
 0x314   : > { %v1899_v7 = vadd.f32 %v1824_v30, %v3285_v25 }
 0x315   : > { %v2063_v11 = vsel %vm2039_vm8, %v2030_v12, 0.0 }
 0x316   : > { %2095 = vst [vmem:[%s3557_s14 + $0xb8] sm:$0xff] %v2063_v11  ;;  %v1794_v45 = vpop.permute.xlu0 %1793 }
 0x317   : > { %v1920_v6 = vpop.permute.xlu1 %1919  ;;  %v1884_v38 = vadd.f32 %v1794_v45, %v3293_v10 }
 0x318   : > { %v2011_v58 = vadd.f32 %v1920_v6, %v1883_v1 }
 0x31a   : > { %v2044_v17 = vsel %vm2039_vm8, %v2011_v58, 0.0  ;;  %v1826_v5 = vpop.permute.xlu0 %1825 }
 0x31b   : > { %2076 = vst [vmem:[%s3557_s14 + $0x20] sm:$0xff] %v2044_v17  ;;  %v1952_v0 = vpop.permute.xlu1 %1951  ;;  %v1900_v37 = vadd.f32 %v1826_v5, %v3312_v33 }
 0x31c   : > { %v2027_v43 = vadd.f32 %v1952_v0, %v1899_v7 }
 0x31e   : > { %v2060_v51 = vsel %vm2039_vm8, %v2027_v43, 0.0  ;;  %v1922_v2 = vpop.permute.xlu0 %1921 }
 0x31f   : > { %2092 = vst [vmem:[%s3557_s14 + $0xa0] sm:$0xff] %v2060_v51  ;;  %v2012_v34 = vadd.f32 %v1922_v2, %v1884_v38  ;;  %v1804_v41 = vpop.permute.xlu1 %1803 }
 0x320   : > { %v1889_v10 = vadd.f32 %v1804_v41, %v3335_v18 }
 0x321   : > { %v2045_v25 = vsel %vm2039_vm8, %v2012_v34, 0.0 }
 0x322   : > { %2077 = vst [vmem:[%s3557_s14 + $0x28] sm:$0xff] %v2045_v25  ;;  %v1954_v31 = vpop.permute.xlu0 %1953 }
 0x323   : > { %v2028_v47 = vadd.f32 %v1954_v31, %v1900_v37  ;;  %v1836_v24 = vpop.permute.xlu1 %1835 }
 0x324   : > { %v1905_v29 = vadd.f32 %v1836_v24, %v3351_v27 }
 0x325   : > { %v2061_v4 = vsel %vm2039_vm8, %v2028_v47, 0.0 }
 0x326   : > { %2093 = vst [vmem:[%s3557_s14 + $0xa8] sm:$0xff] %v2061_v4  ;;  %v1806_v21 = vpop.permute.xlu0 %1805 }
 0x327   : > { %v1932_v32 = vpop.permute.xlu1 %1931  ;;  %v1890_v52 = vadd.f32 %v1806_v21, %v3364_v60 }
 0x328   : > { %v2017_v35 = vadd.f32 %v1932_v32, %v1889_v10 }
 0x32a   : > { %v2050_v33 = vsel %vm2039_vm8, %v2017_v35, 0.0  ;;  %v1838_v48 = vpop.permute.xlu0 %1837 }
 0x32b   : > { %2082 = vst [vmem:[%s3557_s14 + $0x50] sm:$0xff] %v2050_v33  ;;  %v1964_v46 = vpop.permute.xlu1 %1963  ;;  %v1906_v22 = vadd.f32 %v1838_v48, %v3378_v55 }
 0x32c   : > { %v2033_v28 = vadd.f32 %v1964_v46, %v1905_v29 }
 0x32e   : > { %v2066_v54 = vsel %vm2039_vm8, %v2033_v28, 0.0  ;;  %v1934_v42 = vpop.permute.xlu0 %1933 }
 0x32f   : > { %2098 = vst [vmem:[%s3557_s14 + $0xd0] sm:$0xff] %v2066_v54  ;;  %v2018_v18 = vadd.f32 %v1934_v42, %v1890_v52  ;;  %v1800_v36 = vpop.permute.xlu1 %1799 }
 0x330   : > { %v1887_v60 = vadd.f32 %v1800_v36, %v3397_v39 }
 0x331   : > { %v2051_v27 = vsel %vm2039_vm8, %v2018_v18, 0.0 }
 0x332   : > { %2083 = vst [vmem:[%s3557_s14 + $0x58] sm:$0xff] %v2051_v27  ;;  %v1966_v3 = vpop.permute.xlu0 %1965 }
 0x333   : > { %v2034_v15 = vadd.f32 %v1966_v3, %v1906_v22  ;;  %v1832_v16 = vpop.permute.xlu1 %1831 }
 0x334   : > { %v1903_v23 = vadd.f32 %v1832_v16, %v3413_v63 }
 0x335   : > { %v2067_v13 = vsel %vm2039_vm8, %v2034_v15, 0.0 }
 0x336   : > { %2099 = vst [vmem:[%s3557_s14 + $0xd8] sm:$0xff] %v2067_v13  ;;  %v1802_v49 = vpop.permute.xlu0 %1801 }
 0x337   : > { %v1928_v61 = vpop.permute.xlu1 %1927  ;;  %v1888_v12 = vadd.f32 %v1802_v49, %v3426_v62 }
 0x338   : > { %v2015_v20 = vadd.f32 %v1928_v61, %v1887_v60 }
 0x33a   : > { %v2048_v55 = vsel %vm2039_vm8, %v2015_v20, 0.0  ;;  %v1834_v44 = vpop.permute.xlu0 %1833 }
 0x33b   : > { %2080 = vst [vmem:[%s3557_s14 + $0x40] sm:$0xff] %v2048_v55  ;;  %v1960_v53 = vpop.permute.xlu1 %1959  ;;  %v1904_v45 = vadd.f32 %v1834_v44, %v3442_v59 }
 0x33c   : > { %v2031_v56 = vadd.f32 %v1960_v53, %v1903_v23 }
 0x33e   : > { %v2064_v30 = vsel %vm2039_vm8, %v2031_v56, 0.0  ;;  %v1930_v11 = vpop.permute.xlu0 %1929 }
 0x33f   : > { %2096 = vst [vmem:[%s3557_s14 + $0xc0] sm:$0xff] %v2064_v30  ;;  %v2016_v39 = vadd.f32 %v1930_v11, %v1888_v12  ;;  %v1812_v1 = vpop.permute.xlu1 %1811 }
 0x340   : > { %v1893_v62 = vadd.f32 %v1812_v1, %v3468_v19 }
 0x341   : > { %v2049_v63 = vsel %vm2039_vm8, %v2016_v39, 0.0 }
 0x342   : > { %2081 = vst [vmem:[%s3557_s14 + $0x48] sm:$0xff] %v2049_v63  ;;  %v1962_v6 = vpop.permute.xlu0 %1961 }
 0x343   : > { %v2032_v58 = vadd.f32 %v1962_v6, %v1904_v45  ;;  %v1844_v7 = vpop.permute.xlu1 %1843 }
 0x345   : > { %v2065_v17 = vsel %vm2039_vm8, %v2032_v58, 0.0 }
 0x346   : > { %2097 = vst [vmem:[%s3557_s14 + $0xc8] sm:$0xff] %v2065_v17  ;;  %v1814_v5 = vpop.permute.xlu0 %1813 }
 0x347   : > { %v1940_v0 = vpop.permute.xlu1 %1939  ;;  %v1894_v2 = vadd.f32 %v1814_v5, %v3500_v50 }
 0x348   : > { %v2021_v43 = vadd.f32 %v1940_v0, %v1893_v62 }
 0x34a   : > { %v2054_v38 = vsel %vm2039_vm8, %v2021_v43, 0.0  ;;  %v1846_v51 = vpop.permute.xlu0 %1845 }
 0x34b   : > { %2086 = vst [vmem:[%s3557_s14 + $0x70] sm:$0xff] %v2054_v38  ;;  %v1808_v59 = vpop.permute.xlu1 %1807  ;;  %v1910_v42 = vadd.f32 %v1846_v51, %v3516_v57 }
 0x34c   : > { %v1891_v19 = vadd.f32 %v1808_v59, %v3521_v14  ;;  %v1909_v14 = vadd.f32 %v1844_v7, %v3486_v8 }
 0x34e   : > { %v1942_v34 = vpop.permute.xlu0 %1941 }
 0x34f   : > { %v2022_v41 = vadd.f32 %v1942_v34, %v1894_v2  ;;  %v1840_v37 = vpop.permute.xlu1 %1839 }
 0x350   : > { %v1907_v4 = vadd.f32 %v1840_v37, %v3529_v9 }
 0x351   : > { %v2055_v25 = vsel %vm2039_vm8, %v2022_v41, 0.0 }
 0x352   : > { %2087 = vst [vmem:[%s3557_s14 + $0x78] sm:$0xff] %v2055_v25  ;;  %v1810_v31 = vpop.permute.xlu0 %1809 }
 0x353   : > { %v1936_v47 = vpop.permute.xlu1 %1935  ;;  %v1892_v35 = vadd.f32 %v1810_v31, %v3535_v26 }
 0x354   : > { %v2019_v24 = vadd.f32 %v1936_v47, %v1891_v19 }
 0x356   : > { %v2052_v10 = vsel %vm2039_vm8, %v2019_v24, 0.0  ;;  %v1842_v21 = vpop.permute.xlu0 %1841 }
 0x357   : > { %2084 = vst [vmem:[%s3557_s14 + $0x60] sm:$0xff] %v2052_v10  ;;  %v1968_v50 = vpop.permute.xlu1 %1967  ;;  %v1908_v28 = vadd.f32 %v1842_v21, %v3541_v40 }
 0x358   : > { %v2035_v32 = vadd.f32 %v1968_v50, %v1907_v4 }
 0x35a   : > { %v2068_v29 = vsel %vm2039_vm8, %v2035_v32, 0.0  ;;  %v1938_v33 = vpop.permute.xlu0 %1937 }
 0x35b   : > { %2100 = vst [vmem:[%s3557_s14 + $0xe0] sm:$0xff] %v2068_v29  ;;  %v2020_v9 = vadd.f32 %v1938_v33, %v1892_v35  ;;  %v1972_v48 = vpop.permute.xlu1 %1971 }
 0x35c   : > { %v2037_v46 = vadd.f32 %v1972_v48, %v1909_v14 }
 0x35d   : > { %v2053_v52 = vsel %vm2039_vm8, %v2020_v9, 0.0 }
 0x35e   : > { %2085 = vst [vmem:[%s3557_s14 + $0x68] sm:$0xff] %v2053_v52  ;;  %v2070_v26 = vsel %vm2039_vm8, %v2037_v46, 0.0  ;;  %v1970_v54 = vpop.permute.xlu0 %1969 }
 0x35f   : > { %2102 = vst [vmem:[%s3557_s14 + $0xf0] sm:$0xff] %v2070_v26  ;;  %v2036_v8 = vadd.f32 %v1970_v54, %v1908_v28 }
 0x361   : > { %v2069_v18 = vsel %vm2039_vm8, %v2036_v8, 0.0 }
 0x362   : > { %2101 = vst [vmem:[%s3557_s14 + $0xe8] sm:$0xff] %v2069_v18  ;;  %v1974_v36 = vpop.permute.xlu0 %1973 }
 0x363   : > { %v2038_v40 = vadd.f32 %v1974_v36, %v1910_v42 }
 0x365   : > { %v2071_v22 = vsel %vm2039_vm8, %v2038_v40, 0.0 }
 0x366   : > { %2103 = vst [vmem:[%s3557_s14 + $0xf8] sm:$0xff] %v2071_v22 }
 0x367   : > { %2473 = shalt.err (!%p2470_p3)
}
 0x368   : > { %s2474_s28 = scalar_lea.hbm %s3659_s23, 4096  ;;  %s2478_s3 = scalar_lea.hbm %s3709_s2, 16384 }
 0x369   : > { %p2475_p4 = scmp.ne.s32.totalorder %s3659_s23, %s2474_s28  ;;  %p2479_p9 = scmp.lt.s32.totalorder %s3659_s23, %s3709_s2 }
 0x36a   : > { %p2480_p10 = scmp.lt.s32.totalorder %s2478_s3, %s2474_s28 }
 0x36b   : > { %p2476_p7 = pnand %p2475_p4, %p2584_p5 }
 0x36c   : > { %p2481_p11 = por %p2480_p10, %p2479_p9 }
 0x36d   : > { %p2477_p8 = pneg %p2476_p7 }
 0x36f   : > { %p2482_p12 = pnand %p2481_p11, %p2477_p8 }
 0x371   : > { %2485 = shalt.err (!%p2482_p12)
}
 0x372   : > { %s2529_s6 = smov 128   ;;  %s2530_s7 = smov 8  }
 0x373   : > { %2387 = dma.vmem_to_hbm [thread:$0]  (%p2584_p5), %s3661_s17, 4096, %s3659_s23, %s3667_s13, %s2529_s6, %s2529_s6, %s2530_s7  }
 0x374 PF: > { %p2393_p13 = scmp.ge.s32.totalorder %s2520_s12, 2  ;;  %s2133_s8 = sand.u32 1, %s2508_s9  }
 0x375   : > { %s2134_s14 = scalar_lea.sflag [#allocation3], %s2133_s8 }
 0x376   : > { %p2390_p0 = pnand %p2393_p13, %p2588_p6 }
 0x378   : > { %p2391_p1 = pneg %p2390_p0 }
 0x37a   : > { %2503 = dma.done.wait (%p2391_p1), %s2134_s14, 4096  }
 0x37b   : > { %2505 = vsyncadd (%p2391_p1), %s2134_s14, 4294963200  ;;  %p12_p2 = scmp.ge.s32.totalorder %s2571_s15, 6   ;;  %s3840_s9 = smov %s2512_s10 }
 0x37c   : > { %s3841_s10 = smov %s2516_s11  ;;  %s3842_s11 = smov %s2582_s18 }
 0x37d   : > { %s3843_s12 = smov %s2571_s15  ;;  %14 = sbr.rel (!%p12_p2) target bundleno = 3 (0x3), region = 63 }
 0x382   :  { %2139 = vsyncpa [#allocation3], 1 }
 0x383   :  { %2141 = vsyncpa [#allocation3 + $0x1], 1 }

</bundles_post_ra>
